<compile_context>
chip_gen: v6e
topology: v6e:2x2x1
jax: 0.10.0
libtpu: 0.0.40
codegen_flags: <defaults>
</compile_context>

<pallas_src>
import math
import functools
from dataclasses import dataclass

import jax
import jax.numpy as jnp
from jax import lax
from jax.experimental import pallas as pl
from jax.experimental.pallas import tpu as pltpu


@dataclass
class GPTConfig:
    block_size: int = 16
    vocab_size: int = 128
    n_layer: int = 2
    n_head: int = 2
    n_embd: int = 32


def _vmem_limit_bytes():
    # ~75% of physical VMEM, capped at 96 MiB:
    #   v5e/v6e (128 MiB)  -> 96 MiB,   v7x (64 MiB / TC) -> 48 MiB.
    try:
        cap = pltpu.get_tpu_info().vmem_capacity_bytes
        return min(int(cap * 3 // 4), 96 * 1024 * 1024)
    except Exception:
        return 64 * 1024 * 1024


_VMEM_LIMIT = _vmem_limit_bytes()


# ----------------------------- tiling helpers -----------------------------

def _choose_tile(dim, pref, align):
    """Largest multiple of `align` <= pref that evenly divides dim; whole dim if
    it fits; else an aligned tile + cdiv grid (Pallas masks the ragged edge)."""
    if dim <= pref:
        return dim
    t = max((pref // align) * align, align)
    tt = t
    while tt >= align:
        if dim % tt == 0:
            return tt
        tt -= align
    return t


def _linear_tiles(n, k, m, has_ln, has_bias, has_res, out_bytes):
    """VMEM-aware (tm, tn) selection for the fused linear kernel."""
    budget = int(_VMEM_LIMIT * 0.8)
    tm_pref, tn_pref = 256, 512
    while True:
        tm = _choose_tile(n, tm_pref, 16)     # 16: bf16 sublane packing
        tn = _choose_tile(m, tn_pref, 128)
        est = (2 * tm * k * 2                              # x blocks (bf16, double-buffered)
               + (tm * k * 2 if has_ln else 0)             # LN-cache scratch (bf16)
               + 2 * k * tn * 2                            # weight blocks (bf16, double-buffered)
               + (4 * k * 4 if has_ln else 0)              # gamma/beta
               + (2 * tn * 4 if has_bias else 0)           # bias
               + (2 * tm * tn * 2 if has_res else 0)       # residual blocks
               + 2 * tm * tn * out_bytes                   # output blocks
               + 2 * tm * tn * 4)                          # f32 accumulator transients
        if est <= budget or (tm_pref <= 16 and tn_pref <= 128):
            return tm, tn
        if tn_pref > 128:
            tn_pref //= 2
        else:
            tm_pref //= 2


# ----------------------------- fused linear -----------------------------

def _make_linear_kernel(has_ln, has_bias, has_res, activation, trans_w):
    gelu_c = math.sqrt(2.0 / math.pi)

    def kernel(*refs):
        it = iter(refs)
        x_ref = next(it)
        if has_ln:
            g_ref = next(it)
            bta_ref = next(it)
        w_ref = next(it)
        b_ref = next(it) if has_bias else None
        r_ref = next(it) if has_res else None
        o_ref = next(it)
        xs_ref = next(it) if has_ln else None        # VMEM scratch: LN(x) in bf16

        if has_ln:
            # LN + bf16 cast computed once per row-tile (j == 0), reused for all
            # output-column tiles j > 0 (j axis is "arbitrary" -> in-order per core).
            @pl.when(pl.program_id(1) == 0)
            def _():
                x = x_ref[...].astype(jnp.float32)              # (tm, K)
                mu = jnp.mean(x, axis=-1, keepdims=True)
                var = jnp.mean((x - mu) ** 2, axis=-1, keepdims=True)
                xn = (x - mu) * lax.rsqrt(var + 1e-5)           # eps matches PyTorch
                xn = xn * g_ref[...] + bta_ref[...]
                xs_ref[...] = xn.astype(jnp.bfloat16)
            xb = xs_ref[...]
        else:
            xb = x_ref[...]
            if xb.dtype != jnp.bfloat16:
                xb = xb.astype(jnp.bfloat16)

        wb = w_ref[...]
        if wb.dtype != jnp.bfloat16:
            wb = wb.astype(jnp.bfloat16)

        if trans_w:
            # w block is (tn, K); contract last dims -> no transpose in VMEM.
            acc = lax.dot_general(xb, wb, (((1,), (1,)), ((), ())),
                                  preferred_element_type=jnp.float32)
        else:
            acc = jnp.dot(xb, wb, preferred_element_type=jnp.float32)

        if has_bias:
            acc = acc + b_ref[...].astype(jnp.float32)
        if activation == "gelu":                                # GELU(approximate='tanh')
            acc = 0.5 * acc * (1.0 + jnp.tanh(gelu_c * (acc + 0.044715 * acc * acc * acc)))
        if has_res:
            acc = acc + r_ref[...].astype(jnp.float32)
        o_ref[...] = acc.astype(o_ref.dtype)

    return kernel


def fused_linear(x2d, w, b=None, *, ln=None, residual=None, activation=None,
                 trans_w=False, out_dtype=jnp.bfloat16):
    """out = [residual +] act([LN(x)] @ W [+ b]); W is (K, M) or (M, K) if trans_w."""
    n, kin = x2d.shape
    m = w.shape[0] if trans_w else w.shape[1]
    kw = w.shape[1] if trans_w else w.shape[0]
    assert kw == kin

    has_ln = ln is not None
    has_bias = b is not None
    has_res = residual is not None
    out_bytes = jnp.dtype(out_dtype).itemsize
    tm, tn = _linear_tiles(n, kin, m, has_ln, has_bias, has_res, out_bytes)

    kernel = _make_linear_kernel(has_ln, has_bias, has_res, activation, trans_w)

    args = [x2d]
    in_specs = [pl.BlockSpec((tm, kin), lambda i, j: (i, 0))]
    if has_ln:
        gamma, beta = ln
        args += [gamma.reshape(1, kin), beta.reshape(1, kin)]
        in_specs += [pl.BlockSpec((1, kin), lambda i, j: (0, 0)),
                     pl.BlockSpec((1, kin), lambda i, j: (0, 0))]
    args.append(w)
    if trans_w:
        in_specs.append(pl.BlockSpec((tn, kin), lambda i, j: (j, 0)))
    else:
        in_specs.append(pl.BlockSpec((kin, tn), lambda i, j: (0, j)))
    if has_bias:
        args.append(b.reshape(1, m))
        in_specs.append(pl.BlockSpec((1, tn), lambda i, j: (0, j)))
    if has_res:
        args.append(residual)
        in_specs.append(pl.BlockSpec((tm, tn), lambda i, j: (i, j)))

    scratch_shapes = [pltpu.VMEM((tm, kin), jnp.bfloat16)] if has_ln else []
    # j must stay "arbitrary" when the LN result is cached across j tiles.
    semantics = ("parallel", "arbitrary") if has_ln else ("parallel", "parallel")

    return pl.pallas_call(
        kernel,
        out_shape=jax.ShapeDtypeStruct((n, m), out_dtype),
        grid=(pl.cdiv(n, tm), pl.cdiv(m, tn)),
        in_specs=in_specs,
        out_specs=pl.BlockSpec((tm, tn), lambda i, j: (i, j)),
        scratch_shapes=scratch_shapes,
        compiler_params=pltpu.CompilerParams(
            dimension_semantics=semantics,
            vmem_limit_bytes=_VMEM_LIMIT),
    )(*args)


# ----------------------------- causal attention -----------------------------

def _make_attention_kernel(n_head, head_dim, scale):
    C = n_head * head_dim

    def kernel(qkv_ref, o_ref):
        qkv = qkv_ref[...]                                     # (gb, T, 3C) bf16
        gb, T, _ = qkv.shape

        row = lax.broadcasted_iota(jnp.int32, (T, T), 0)
        col = lax.broadcasted_iota(jnp.int32, (T, T), 1)
        mask = (col <= row)[None, :, :]                        # (1, T, T)

        outs = []
        # TODO(synk): for head_dim >= 128 the per-head lane slices / concat could
        # be replaced by a head grid axis on a head-major QKV layout.
        for h in range(n_head):                                # static head loop
            lo = h * head_dim
            q = qkv[:, :, lo:lo + head_dim]
            k = qkv[:, :, C + lo:C + lo + head_dim]
            v = qkv[:, :, 2 * C + lo:2 * C + lo + head_dim]

            # (gb, T, T) scores: contract head_dim, batch over gb (no k.T).
            s = lax.dot_general(q, k, (((2,), (2,)), ((0,), (0,))),
                                preferred_element_type=jnp.float32) * scale
            s = jnp.where(mask, s, -jnp.inf)                   # diagonal always kept
            s = s - jnp.max(s, axis=-1, keepdims=True)
            p = jnp.exp(s)
            # normalize the (gb,T,hd) output instead of the (gb,T,T) probs; EUP rcp.
            inv = pl.reciprocal(jnp.sum(p, axis=-1, keepdims=True), approx=True)
            y = lax.dot_general(p.astype(jnp.bfloat16), v,
                                (((2,), (1,)), ((0,), (0,))),
                                preferred_element_type=jnp.float32)  # (gb, T, hd)
            outs.append(y * inv)

        # one lane-dense (gb, T, C) store
        o_ref[...] = jnp.concatenate(outs, axis=-1).astype(o_ref.dtype)

    return kernel


def causal_attention(qkv3d, *, n_head):
    # qkv3d: (B, T, 3C) laid out as [q | k | v] along the last dim.
    B, T, threeC = qkv3d.shape
    C = threeC // 3
    hd = C // n_head

    # VMEM-aware batches-per-step; prefer >= 2 grid steps so megacore has work.
    budget = int(_VMEM_LIMIT * 0.7)

    def fits(g):
        est = (2 * g * T * threeC * 2        # qkv blocks (bf16, double-buffered)
               + 2 * g * T * C * 2           # output blocks
               + g * T * T * 4 * 3           # f32 score / softmax transients
               + g * T * hd * 4 * 2)
        return est <= budget

    fitting = [g for g in range(min(B, 8), 0, -1) if B % g == 0 and fits(g)]
    if fitting:
        multi = [g for g in fitting if B // g >= 2]
        gb = multi[0] if multi else fitting[0]
    else:
        gb = 1

    kernel = _make_attention_kernel(n_head, hd, 1.0 / math.sqrt(hd))
    # TODO(synk): for long sequences (T >~ 512, earlier on v7x) switch to
    # flash-style kv tiling with online softmax instead of the (T, T) scores.
    return pl.pallas_call(
        kernel,
        out_shape=jax.ShapeDtypeStruct((B, T, C), qkv3d.dtype),
        grid=(B // gb,),
        in_specs=[pl.BlockSpec((gb, T, threeC), lambda i: (i, 0, 0))],
        out_specs=pl.BlockSpec((gb, T, C), lambda i: (i, 0, 0)),
        compiler_params=pltpu.CompilerParams(
            dimension_semantics=("parallel",),
            vmem_limit_bytes=_VMEM_LIMIT),
    )(qkv3d)


# ----------------------------- parameters -----------------------------

def init_params(key, cfg: GPTConfig):
    # Matmul weights & embeddings stored in bf16 (halves HBM weight traffic);
    # LN params and biases stay f32 (tiny, applied in f32 inside the kernels).
    def normal_bf16(k, shape):
        return (0.02 * jax.random.normal(k, shape, dtype=jnp.float32)).astype(jnp.bfloat16)

    n_keys = 2 + 4 * cfg.n_layer
    keys = iter(jax.random.split(key, n_keys))
    params = {
        'wte': normal_bf16(next(keys), (cfg.vocab_size, cfg.n_embd)),  # tied with lm_head
        'wpe': normal_bf16(next(keys), (cfg.block_size, cfg.n_embd)),
        'lnf_g': jnp.ones((cfg.n_embd,), jnp.float32),
        'lnf_b': jnp.zeros((cfg.n_embd,), jnp.float32),
        'blocks': [],
    }
    C = cfg.n_embd
    for _ in range(cfg.n_layer):
        params['blocks'].append({
            'ln1_g': jnp.ones((C,), jnp.float32), 'ln1_b': jnp.zeros((C,), jnp.float32),
            'attn_w': normal_bf16(next(keys), (C, 3 * C)), 'attn_b': jnp.zeros((3 * C,), jnp.float32),
            'proj_w': normal_bf16(next(keys), (C, C)), 'proj_b': jnp.zeros((C,), jnp.float32),
            'ln2_g': jnp.ones((C,), jnp.float32), 'ln2_b': jnp.zeros((C,), jnp.float32),
            'fc_w': normal_bf16(next(keys), (C, 4 * C)), 'fc_b': jnp.zeros((4 * C,), jnp.float32),
            'fcp_w': normal_bf16(next(keys), (4 * C, C)), 'fcp_b': jnp.zeros((C,), jnp.float32),
        })
    return params


# ----------------------------- forward pass -----------------------------

def gpt_forward(params, idx, cfg: GPTConfig):
    B, T = idx.shape
    assert T <= cfg.block_size
    C, nh = cfg.n_embd, cfg.n_head

    # TODO(synk): embedding gather (wte/wpe lookup) has no efficient small-shape
    # Pallas equivalent; kept as XLA jnp.take + add (XLA fuses gather+add, so the
    # pos-emb add does not cost an extra HBM pass).
    tok_emb = jnp.take(params['wte'], idx, axis=0)             # (B, T, C) bf16
    pos_emb = params['wpe'][:T]                                # (T, C) bf16
    x = (tok_emb + pos_emb[None, :, :]).reshape(B * T, C)      # flat bf16 slab

    for blk in params['blocks']:
        # --- attention sub-block:  x = x + proj(attn(LN1(x))) ---
        qkv = fused_linear(x, blk['attn_w'], blk['attn_b'],
                           ln=(blk['ln1_g'], blk['ln1_b']))    # (B*T, 3C) bf16
        y = causal_attention(qkv.reshape(B, T, 3 * C), n_head=nh)  # (B, T, C) bf16
        x = fused_linear(y.reshape(B * T, C), blk['proj_w'], blk['proj_b'],
                         residual=x)                           # fused residual add

        # --- MLP sub-block:  x = x + fcp(gelu(fc(LN2(x)))) ---
        h = fused_linear(x, blk['fc_w'], blk['fc_b'],
                         ln=(blk['ln2_g'], blk['ln2_b']), activation='gelu')
        x = fused_linear(h, blk['fcp_w'], blk['fcp_b'], residual=x)

    # final LN fused into the tied lm_head (wte stored (vocab, C), trans_w path,
    # no bias) -> no materialized wte.T and no zero-bias HBM read; logits in f32.
    logits = fused_linear(x, params['wte'],
                          ln=(params['lnf_g'], params['lnf_b']),
                          trans_w=True, out_dtype=jnp.float32)
    return logits.reshape(B, T, cfg.vocab_size)
    # TODO(synk): cross-entropy loss path (targets is not None) not implemented;
    # forward returns logits only, matching targets=None semantics.


if __name__ == "__main__":
    cfg = GPTConfig(block_size=16, vocab_size=128, n_layer=2, n_head=2, n_embd=32)
    key = jax.random.PRNGKey(0)
    pkey, ikey = jax.random.split(key)
    params = init_params(pkey, cfg)

    B, T = 2, 8
    idx = jax.random.randint(ikey, (B, T), 0, cfg.vocab_size, dtype=jnp.int32)

    fwd = jax.jit(functools.partial(gpt_forward, cfg=cfg))
    logits = fwd(params, idx)
    jax.block_until_ready(logits)
    assert logits.shape == (B, T, cfg.vocab_size)
    assert logits.dtype == jnp.float32
    assert bool(jnp.all(jnp.isfinite(logits)))
    print("KERNEL_OK")
</pallas_src>

<mosaic_0001>
module attributes {stable_mosaic.version = 11 : i64} {
  func.func @kernel(%arg0: i32, %arg1: memref<1x8x96xbf16, #tpu.memory_space<vmem>>, %arg2: memref<1x8x32xbf16, #tpu.memory_space<vmem>>) attributes {dimension_semantics = [#tpu.dimension_semantics<parallel>], iteration_bounds = array<i64: 2>, scalar_prefetch = 0 : i64, scratch_operands = 0 : i64, tpu.core_type = #tpu.core_type<tc>, window_params = [{transform_indices = @transform_0, window_bounds = array<i64: 1, 8, 96>}, {transform_indices = @transform_1, window_bounds = array<i64: 1, 8, 32>}]} {
    %c0 = arith.constant 0 : index
    %c0_0 = arith.constant 0 : index
    %c0_1 = arith.constant 0 : index
    %0 = vector.load %arg1[%c0, %c0_0, %c0_1] : memref<1x8x96xbf16, #tpu.memory_space<vmem>>, vector<1x8x96xbf16>
    %1 = tpu.iota {dimensions = array<i32: 0>} : vector<8x8xi32>
    %2 = tpu.iota {dimensions = array<i32: 1>} : vector<8x8xi32>
    %3 = arith.cmpi sle, %2, %1 : vector<8x8xi32>
    %4 = vector.shape_cast %3 : vector<8x8xi1> to vector<1x8x8xi1>
    %5 = vector.extract_strided_slice %0 {offsets = [0, 0, 0], sizes = [1, 8, 16], strides = [1, 1, 1]} : vector<1x8x96xbf16> to vector<1x8x16xbf16>
    %6 = vector.extract_strided_slice %0 {offsets = [0, 0, 32], sizes = [1, 8, 16], strides = [1, 1, 1]} : vector<1x8x96xbf16> to vector<1x8x16xbf16>
    %7 = vector.extract_strided_slice %0 {offsets = [0, 0, 64], sizes = [1, 8, 16], strides = [1, 1, 1]} : vector<1x8x96xbf16> to vector<1x8x16xbf16>
    %cst = arith.constant dense<0.000000e+00> : vector<1x8x8xf32>
    %8 = tpu.matmul %5, %6, %cst {dimension_numbers = #tpu.dot_dimension_numbers<[2], [2], [1], [1], [0, 0, 0, 1, 1, 1], [0], [0]>} : vector<1x8x16xbf16>, vector<1x8x16xbf16>, vector<1x8x8xf32> -> vector<1x8x8xf32>
    %cst_2 = arith.constant 2.500000e-01 : f32
    %9 = vector.broadcast %cst_2 : f32 to vector<1x8x8xf32>
    %10 = arith.mulf %8, %9 : vector<1x8x8xf32>
    %cst_3 = arith.constant 0xFF800000 : f32
    %11 = vector.broadcast %cst_3 : f32 to vector<1x8x8xf32>
    %12 = arith.select %4, %10, %11 : vector<1x8x8xi1>, vector<1x8x8xf32>
    %cst_4 = arith.constant dense<0xFF800000> : vector<1x8xf32>
    %13 = vector.multi_reduction <maximumf>, %12, %cst_4 [2] : vector<1x8x8xf32> to vector<1x8xf32>
    %14 = vector.shape_cast %13 : vector<1x8xf32> to vector<1x8x1xf32>
    %15 = vector.broadcast %14 : vector<1x8x1xf32> to vector<1x8x8xf32>
    %16 = arith.subf %12, %15 : vector<1x8x8xf32>
    %17 = math.exp %16 : vector<1x8x8xf32>
    %cst_5 = arith.constant dense<0.000000e+00> : vector<1x8xf32>
    %18 = vector.multi_reduction <add>, %17, %cst_5 [2] : vector<1x8x8xf32> to vector<1x8xf32>
    %19 = vector.shape_cast %18 : vector<1x8xf32> to vector<1x8x1xf32>
    %20 = tpu.reciprocal %19 {approx = true} : vector<1x8x1xf32> -> vector<1x8x1xf32>
    %21 = arith.truncf %17 : vector<1x8x8xf32> to vector<1x8x8xbf16>
    %cst_6 = arith.constant dense<0.000000e+00> : vector<1x8x16xf32>
    %22 = tpu.matmul %21, %7, %cst_6 {dimension_numbers = #tpu.dot_dimension_numbers<[2], [1], [1], [2], [0, 0, 0, 1, 1, 2], [0], [0]>} : vector<1x8x8xbf16>, vector<1x8x16xbf16>, vector<1x8x16xf32> -> vector<1x8x16xf32>
    %23 = vector.broadcast %20 : vector<1x8x1xf32> to vector<1x8x16xf32>
    %24 = arith.mulf %22, %23 : vector<1x8x16xf32>
    %25 = vector.extract_strided_slice %0 {offsets = [0, 0, 16], sizes = [1, 8, 16], strides = [1, 1, 1]} : vector<1x8x96xbf16> to vector<1x8x16xbf16>
    %26 = vector.extract_strided_slice %0 {offsets = [0, 0, 48], sizes = [1, 8, 16], strides = [1, 1, 1]} : vector<1x8x96xbf16> to vector<1x8x16xbf16>
    %27 = vector.extract_strided_slice %0 {offsets = [0, 0, 80], sizes = [1, 8, 16], strides = [1, 1, 1]} : vector<1x8x96xbf16> to vector<1x8x16xbf16>
    %cst_7 = arith.constant dense<0.000000e+00> : vector<1x8x8xf32>
    %28 = tpu.matmul %25, %26, %cst_7 {dimension_numbers = #tpu.dot_dimension_numbers<[2], [2], [1], [1], [0, 0, 0, 1, 1, 1], [0], [0]>} : vector<1x8x16xbf16>, vector<1x8x16xbf16>, vector<1x8x8xf32> -> vector<1x8x8xf32>
    %cst_8 = arith.constant 2.500000e-01 : f32
    %29 = vector.broadcast %cst_8 : f32 to vector<1x8x8xf32>
    %30 = arith.mulf %28, %29 : vector<1x8x8xf32>
    %cst_9 = arith.constant 0xFF800000 : f32
    %31 = vector.broadcast %cst_9 : f32 to vector<1x8x8xf32>
    %32 = arith.select %4, %30, %31 : vector<1x8x8xi1>, vector<1x8x8xf32>
    %cst_10 = arith.constant dense<0xFF800000> : vector<1x8xf32>
    %33 = vector.multi_reduction <maximumf>, %32, %cst_10 [2] : vector<1x8x8xf32> to vector<1x8xf32>
    %34 = vector.shape_cast %33 : vector<1x8xf32> to vector<1x8x1xf32>
    %35 = vector.broadcast %34 : vector<1x8x1xf32> to vector<1x8x8xf32>
    %36 = arith.subf %32, %35 : vector<1x8x8xf32>
    %37 = math.exp %36 : vector<1x8x8xf32>
    %cst_11 = arith.constant dense<0.000000e+00> : vector<1x8xf32>
    %38 = vector.multi_reduction <add>, %37, %cst_11 [2] : vector<1x8x8xf32> to vector<1x8xf32>
    %39 = vector.shape_cast %38 : vector<1x8xf32> to vector<1x8x1xf32>
    %40 = tpu.reciprocal %39 {approx = true} : vector<1x8x1xf32> -> vector<1x8x1xf32>
    %41 = arith.truncf %37 : vector<1x8x8xf32> to vector<1x8x8xbf16>
    %cst_12 = arith.constant dense<0.000000e+00> : vector<1x8x16xf32>
    %42 = tpu.matmul %41, %27, %cst_12 {dimension_numbers = #tpu.dot_dimension_numbers<[2], [1], [1], [2], [0, 0, 0, 1, 1, 2], [0], [0]>} : vector<1x8x8xbf16>, vector<1x8x16xbf16>, vector<1x8x16xf32> -> vector<1x8x16xf32>
    %43 = vector.broadcast %40 : vector<1x8x1xf32> to vector<1x8x16xf32>
    %44 = arith.mulf %42, %43 : vector<1x8x16xf32>
    %45 = tpu.concatenate %24, %44 in 2 : vector<1x8x16xf32>, vector<1x8x16xf32> -> vector<1x8x32xf32>
    %46 = arith.truncf %45 : vector<1x8x32xf32> to vector<1x8x32xbf16>
    %c0_13 = arith.constant 0 : index
    %c0_14 = arith.constant 0 : index
    %c0_15 = arith.constant 0 : index
    %47 = vector.load %arg2[%c0_13, %c0_14, %c0_15] : memref<1x8x32xbf16, #tpu.memory_space<vmem>>, vector<1x8x32xbf16>
    tpu.vector_store %arg2[%c0_13, %c0_14, %c0_15], %46 {strides = array<i32>} : memref<1x8x32xbf16, #tpu.memory_space<vmem>>, vector<1x8x32xbf16>,
    return
  }
  func.func @transform_0(%arg0: i32) -> (i32, i32, i32) {
    %c0_i32 = arith.constant 0 : i32
    %c0_i32_0 = arith.constant 0 : i32
    %c0_i32_1 = arith.constant 0 : i32
    return %arg0, %c0_i32, %c0_i32_0 : i32, i32, i32
  }
  func.func @transform_1(%arg0: i32) -> (i32, i32, i32) {
    %c0_i32 = arith.constant 0 : i32
    %c0_i32_0 = arith.constant 0 : i32
    %c0_i32_1 = arith.constant 0 : i32
    return %arg0, %c0_i32, %c0_i32_0 : i32, i32, i32
  }
}

module attributes {stable_mosaic.version = 11 : i64} {
  func.func @kernel(%arg0: i32, %arg1: i32, %arg2: memref<16x32xbf16, #tpu.memory_space<vmem>>, %arg3: memref<1x32xf32, #tpu.memory_space<vmem>>, %arg4: memref<1x32xf32, #tpu.memory_space<vmem>>, %arg5: memref<32x96xbf16, #tpu.memory_space<vmem>>, %arg6: memref<1x96xf32, #tpu.memory_space<vmem>>, %arg7: memref<16x96xbf16, #tpu.memory_space<vmem>>, %arg8: memref<16x32xbf16, #tpu.memory_space<vmem>>) attributes {dimension_semantics = [#tpu.dimension_semantics<parallel>, #tpu.dimension_semantics<arbitrary>], iteration_bounds = array<i64: 1, 1>, scalar_prefetch = 0 : i64, scratch_operands = 1 : i64, tpu.core_type = #tpu.core_type<tc>, window_params = [{transform_indices = @transform_0, window_bounds = array<i64: 16, 32>}, {pipeline_mode = #tpu.pipeline_mode<synchronous>, transform_indices = @transform_1, window_bounds = array<i64: 1, 32>}, {pipeline_mode = #tpu.pipeline_mode<synchronous>, transform_indices = @transform_2, window_bounds = array<i64: 1, 32>}, {transform_indices = @transform_3, window_bounds = array<i64: 32, 96>}, {transform_indices = @transform_4, window_bounds = array<i64: 1, 96>}, {transform_indices = @transform_5, window_bounds = array<i64: 16, 96>}]} {
    %c0_i32 = arith.constant 0 : i32
    %0 = arith.cmpi eq, %arg1, %c0_i32 : i32
    %1 = arith.extui %0 : i1 to i32
    %c0_i32_0 = arith.constant 0 : i32
    %2 = arith.cmpi ne, %1, %c0_i32_0 : i32
    scf.if %2 {
      %c0_8 = arith.constant 0 : index
      %c0_9 = arith.constant 0 : index
      %11 = vector.load %arg2[%c0_8, %c0_9] : memref<16x32xbf16, #tpu.memory_space<vmem>>, vector<16x32xbf16>
      %12 = arith.extf %11 : vector<16x32xbf16> to vector<16x32xf32>
      %cst_10 = arith.constant dense<0.000000e+00> : vector<16xf32>
      %13 = vector.multi_reduction <add>, %12, %cst_10 [1] : vector<16x32xf32> to vector<16xf32>
      %14 = vector.shape_cast %13 : vector<16xf32> to vector<16x1xf32>
      %cst_11 = arith.constant 3.200000e+01 : f32
      %15 = vector.broadcast %cst_11 : f32 to vector<16x1xf32>
      %16 = arith.divf %14, %15 : vector<16x1xf32>
      %17 = vector.broadcast %16 : vector<16x1xf32> to vector<16x32xf32>
      %18 = arith.subf %12, %17 : vector<16x32xf32>
      %19 = arith.mulf %18, %18 : vector<16x32xf32>
      %cst_12 = arith.constant dense<0.000000e+00> : vector<16xf32>
      %20 = vector.multi_reduction <add>, %19, %cst_12 [1] : vector<16x32xf32> to vector<16xf32>
      %21 = vector.shape_cast %20 : vector<16xf32> to vector<16x1xf32>
      %cst_13 = arith.constant 3.200000e+01 : f32
      %22 = vector.broadcast %cst_13 : f32 to vector<16x1xf32>
      %23 = arith.divf %21, %22 : vector<16x1xf32>
      %24 = vector.broadcast %16 : vector<16x1xf32> to vector<16x32xf32>
      %25 = arith.subf %12, %24 : vector<16x32xf32>
      %cst_14 = arith.constant 9.99999974E-6 : f32
      %26 = vector.broadcast %cst_14 : f32 to vector<16x1xf32>
      %27 = arith.addf %23, %26 : vector<16x1xf32>
      %28 = math.rsqrt %27 : vector<16x1xf32>
      %29 = vector.broadcast %28 : vector<16x1xf32> to vector<16x32xf32>
      %30 = arith.mulf %25, %29 : vector<16x32xf32>
      %c0_15 = arith.constant 0 : index
      %c0_16 = arith.constant 0 : index
      %31 = vector.load %arg3[%c0_15, %c0_16] : memref<1x32xf32, #tpu.memory_space<vmem>>, vector<1x32xf32>
      %32 = vector.broadcast %31 : vector<1x32xf32> to vector<16x32xf32>
      %33 = arith.mulf %30, %32 : vector<16x32xf32>
      %c0_17 = arith.constant 0 : index
      %c0_18 = arith.constant 0 : index
      %34 = vector.load %arg4[%c0_17, %c0_18] : memref<1x32xf32, #tpu.memory_space<vmem>>, vector<1x32xf32>
      %35 = vector.broadcast %34 : vector<1x32xf32> to vector<16x32xf32>
      %36 = arith.addf %33, %35 : vector<16x32xf32>
      %37 = arith.truncf %36 : vector<16x32xf32> to vector<16x32xbf16>
      %c0_19 = arith.constant 0 : index
      %c0_20 = arith.constant 0 : index
      %38 = vector.load %arg8[%c0_19, %c0_20] : memref<16x32xbf16, #tpu.memory_space<vmem>>, vector<16x32xbf16>
      tpu.vector_store %arg8[%c0_19, %c0_20], %37 {strides = array<i32>} : memref<16x32xbf16, #tpu.memory_space<vmem>>, vector<16x32xbf16>,
    } else {
    }
    %c0 = arith.constant 0 : index
    %c0_1 = arith.constant 0 : index
    %3 = vector.load %arg8[%c0, %c0_1] : memref<16x32xbf16, #tpu.memory_space<vmem>>, vector<16x32xbf16>
    %c0_2 = arith.constant 0 : index
    %c0_3 = arith.constant 0 : index
    %4 = vector.load %arg5[%c0_2, %c0_3] : memref<32x96xbf16, #tpu.memory_space<vmem>>, vector<32x96xbf16>
    %cst = arith.constant dense<0.000000e+00> : vector<16x96xf32>
    %5 = tpu.matmul %3, %4, %cst {dimension_numbers = #tpu.dot_dimension_numbers<[1], [0], [0], [1], [0, 0, 1, 1], [], []>} : vector<16x32xbf16>, vector<32x96xbf16>, vector<16x96xf32> -> vector<16x96xf32>
    %c0_4 = arith.constant 0 : index
    %c0_5 = arith.constant 0 : index
    %6 = vector.load %arg6[%c0_4, %c0_5] : memref<1x96xf32, #tpu.memory_space<vmem>>, vector<1x96xf32>
    %7 = vector.broadcast %6 : vector<1x96xf32> to vector<16x96xf32>
    %8 = arith.addf %5, %7 : vector<16x96xf32>
    %9 = arith.truncf %8 : vector<16x96xf32> to vector<16x96xbf16>
    %c0_6 = arith.constant 0 : index
    %c0_7 = arith.constant 0 : index
    %10 = vector.load %arg7[%c0_6, %c0_7] : memref<16x96xbf16, #tpu.memory_space<vmem>>, vector<16x96xbf16>
    tpu.vector_store %arg7[%c0_6, %c0_7], %9 {strides = array<i32>} : memref<16x96xbf16, #tpu.memory_space<vmem>>, vector<16x96xbf16>,
    return
  }
  func.func @transform_0(%arg0: i32, %arg1: i32) -> (i32, i32) {
    %c0_i32 = arith.constant 0 : i32
    %c0_i32_0 = arith.constant 0 : i32
    return %arg0, %c0_i32 : i32, i32
  }
  func.func @transform_1(%arg0: i32, %arg1: i32) -> (i32, i32) {
    %c0_i32 = arith.constant 0 : i32
    %c0_i32_0 = arith.constant 0 : i32
    %c0_i32_1 = arith.constant 0 : i32
    return %c0_i32, %c0_i32_0 : i32, i32
  }
  func.func @transform_2(%arg0: i32, %arg1: i32) -> (i32, i32) {
    %c0_i32 = arith.constant 0 : i32
    %c0_i32_0 = arith.constant 0 : i32
    %c0_i32_1 = arith.constant 0 : i32
    return %c0_i32, %c0_i32_0 : i32, i32
  }
  func.func @transform_3(%arg0: i32, %arg1: i32) -> (i32, i32) {
    %c0_i32 = arith.constant 0 : i32
    %c0_i32_0 = arith.constant 0 : i32
    return %c0_i32, %arg1 : i32, i32
  }
  func.func @transform_4(%arg0: i32, %arg1: i32) -> (i32, i32) {
    %c0_i32 = arith.constant 0 : i32
    %c0_i32_0 = arith.constant 0 : i32
    return %c0_i32, %arg1 : i32, i32
  }
  func.func @transform_5(%arg0: i32, %arg1: i32) -> (i32, i32) {
    %c0_i32 = arith.constant 0 : i32
    return %arg0, %arg1 : i32, i32
  }
}

module attributes {stable_mosaic.version = 11 : i64} {
  func.func @kernel(%arg0: i32, %arg1: i32, %arg2: memref<16x32xbf16, #tpu.memory_space<vmem>>, %arg3: memref<1x32xf32, #tpu.memory_space<vmem>>, %arg4: memref<1x32xf32, #tpu.memory_space<vmem>>, %arg5: memref<32x128xbf16, #tpu.memory_space<vmem>>, %arg6: memref<1x128xf32, #tpu.memory_space<vmem>>, %arg7: memref<16x128xbf16, #tpu.memory_space<vmem>>, %arg8: memref<16x32xbf16, #tpu.memory_space<vmem>>) attributes {dimension_semantics = [#tpu.dimension_semantics<parallel>, #tpu.dimension_semantics<arbitrary>], iteration_bounds = array<i64: 1, 1>, scalar_prefetch = 0 : i64, scratch_operands = 1 : i64, tpu.core_type = #tpu.core_type<tc>, window_params = [{transform_indices = @transform_0, window_bounds = array<i64: 16, 32>}, {pipeline_mode = #tpu.pipeline_mode<synchronous>, transform_indices = @transform_1, window_bounds = array<i64: 1, 32>}, {pipeline_mode = #tpu.pipeline_mode<synchronous>, transform_indices = @transform_2, window_bounds = array<i64: 1, 32>}, {transform_indices = @transform_3, window_bounds = array<i64: 32, 128>}, {transform_indices = @transform_4, window_bounds = array<i64: 1, 128>}, {transform_indices = @transform_5, window_bounds = array<i64: 16, 128>}]} {
    %c0_i32 = arith.constant 0 : i32
    %0 = arith.cmpi eq, %arg1, %c0_i32 : i32
    %1 = arith.extui %0 : i1 to i32
    %c0_i32_0 = arith.constant 0 : i32
    %2 = arith.cmpi ne, %1, %c0_i32_0 : i32
    scf.if %2 {
      %c0_12 = arith.constant 0 : index
      %c0_13 = arith.constant 0 : index
      %24 = vector.load %arg2[%c0_12, %c0_13] : memref<16x32xbf16, #tpu.memory_space<vmem>>, vector<16x32xbf16>
      %25 = arith.extf %24 : vector<16x32xbf16> to vector<16x32xf32>
      %cst_14 = arith.constant dense<0.000000e+00> : vector<16xf32>
      %26 = vector.multi_reduction <add>, %25, %cst_14 [1] : vector<16x32xf32> to vector<16xf32>
      %27 = vector.shape_cast %26 : vector<16xf32> to vector<16x1xf32>
      %cst_15 = arith.constant 3.200000e+01 : f32
      %28 = vector.broadcast %cst_15 : f32 to vector<16x1xf32>
      %29 = arith.divf %27, %28 : vector<16x1xf32>
      %30 = vector.broadcast %29 : vector<16x1xf32> to vector<16x32xf32>
      %31 = arith.subf %25, %30 : vector<16x32xf32>
      %32 = arith.mulf %31, %31 : vector<16x32xf32>
      %cst_16 = arith.constant dense<0.000000e+00> : vector<16xf32>
      %33 = vector.multi_reduction <add>, %32, %cst_16 [1] : vector<16x32xf32> to vector<16xf32>
      %34 = vector.shape_cast %33 : vector<16xf32> to vector<16x1xf32>
      %cst_17 = arith.constant 3.200000e+01 : f32
      %35 = vector.broadcast %cst_17 : f32 to vector<16x1xf32>
      %36 = arith.divf %34, %35 : vector<16x1xf32>
      %37 = vector.broadcast %29 : vector<16x1xf32> to vector<16x32xf32>
      %38 = arith.subf %25, %37 : vector<16x32xf32>
      %cst_18 = arith.constant 9.99999974E-6 : f32
      %39 = vector.broadcast %cst_18 : f32 to vector<16x1xf32>
      %40 = arith.addf %36, %39 : vector<16x1xf32>
      %41 = math.rsqrt %40 : vector<16x1xf32>
      %42 = vector.broadcast %41 : vector<16x1xf32> to vector<16x32xf32>
      %43 = arith.mulf %38, %42 : vector<16x32xf32>
      %c0_19 = arith.constant 0 : index
      %c0_20 = arith.constant 0 : index
      %44 = vector.load %arg3[%c0_19, %c0_20] : memref<1x32xf32, #tpu.memory_space<vmem>>, vector<1x32xf32>
      %45 = vector.broadcast %44 : vector<1x32xf32> to vector<16x32xf32>
      %46 = arith.mulf %43, %45 : vector<16x32xf32>
      %c0_21 = arith.constant 0 : index
      %c0_22 = arith.constant 0 : index
      %47 = vector.load %arg4[%c0_21, %c0_22] : memref<1x32xf32, #tpu.memory_space<vmem>>, vector<1x32xf32>
      %48 = vector.broadcast %47 : vector<1x32xf32> to vector<16x32xf32>
      %49 = arith.addf %46, %48 : vector<16x32xf32>
      %50 = arith.truncf %49 : vector<16x32xf32> to vector<16x32xbf16>
      %c0_23 = arith.constant 0 : index
      %c0_24 = arith.constant 0 : index
      %51 = vector.load %arg8[%c0_23, %c0_24] : memref<16x32xbf16, #tpu.memory_space<vmem>>, vector<16x32xbf16>
      tpu.vector_store %arg8[%c0_23, %c0_24], %50 {strides = array<i32>} : memref<16x32xbf16, #tpu.memory_space<vmem>>, vector<16x32xbf16>,
    } else {
    }
    %c0 = arith.constant 0 : index
    %c0_1 = arith.constant 0 : index
    %3 = vector.load %arg8[%c0, %c0_1] : memref<16x32xbf16, #tpu.memory_space<vmem>>, vector<16x32xbf16>
    %c0_2 = arith.constant 0 : index
    %c0_3 = arith.constant 0 : index
    %4 = vector.load %arg5[%c0_2, %c0_3] : memref<32x128xbf16, #tpu.memory_space<vmem>>, vector<32x128xbf16>
    %cst = arith.constant dense<0.000000e+00> : vector<16x128xf32>
    %5 = tpu.matmul %3, %4, %cst {dimension_numbers = #tpu.dot_dimension_numbers<[1], [0], [0], [1], [0, 0, 1, 1], [], []>} : vector<16x32xbf16>, vector<32x128xbf16>, vector<16x128xf32> -> vector<16x128xf32>
    %c0_4 = arith.constant 0 : index
    %c0_5 = arith.constant 0 : index
    %6 = vector.load %arg6[%c0_4, %c0_5] : memref<1x128xf32, #tpu.memory_space<vmem>>, vector<1x128xf32>
    %7 = vector.broadcast %6 : vector<1x128xf32> to vector<16x128xf32>
    %8 = arith.addf %5, %7 : vector<16x128xf32>
    %cst_6 = arith.constant 5.000000e-01 : f32
    %9 = vector.broadcast %cst_6 : f32 to vector<16x128xf32>
    %10 = arith.mulf %9, %8 : vector<16x128xf32>
    %cst_7 = arith.constant 4.471500e-02 : f32
    %11 = vector.broadcast %cst_7 : f32 to vector<16x128xf32>
    %12 = arith.mulf %11, %8 : vector<16x128xf32>
    %13 = arith.mulf %12, %8 : vector<16x128xf32>
    %14 = arith.mulf %13, %8 : vector<16x128xf32>
    %15 = arith.addf %8, %14 : vector<16x128xf32>
    %cst_8 = arith.constant 0.797884583 : f32
    %16 = vector.broadcast %cst_8 : f32 to vector<16x128xf32>
    %17 = arith.mulf %16, %15 : vector<16x128xf32>
    %18 = math.tanh %17 : vector<16x128xf32>
    %cst_9 = arith.constant 1.000000e+00 : f32
    %19 = vector.broadcast %cst_9 : f32 to vector<16x128xf32>
    %20 = arith.addf %19, %18 : vector<16x128xf32>
    %21 = arith.mulf %10, %20 : vector<16x128xf32>
    %22 = arith.truncf %21 : vector<16x128xf32> to vector<16x128xbf16>
    %c0_10 = arith.constant 0 : index
    %c0_11 = arith.constant 0 : index
    %23 = vector.load %arg7[%c0_10, %c0_11] : memref<16x128xbf16, #tpu.memory_space<vmem>>, vector<16x128xbf16>
    tpu.vector_store %arg7[%c0_10, %c0_11], %22 {strides = array<i32>} : memref<16x128xbf16, #tpu.memory_space<vmem>>, vector<16x128xbf16>,
    return
  }
  func.func @transform_0(%arg0: i32, %arg1: i32) -> (i32, i32) {
    %c0_i32 = arith.constant 0 : i32
    %c0_i32_0 = arith.constant 0 : i32
    return %arg0, %c0_i32 : i32, i32
  }
  func.func @transform_1(%arg0: i32, %arg1: i32) -> (i32, i32) {
    %c0_i32 = arith.constant 0 : i32
    %c0_i32_0 = arith.constant 0 : i32
    %c0_i32_1 = arith.constant 0 : i32
    return %c0_i32, %c0_i32_0 : i32, i32
  }
  func.func @transform_2(%arg0: i32, %arg1: i32) -> (i32, i32) {
    %c0_i32 = arith.constant 0 : i32
    %c0_i32_0 = arith.constant 0 : i32
    %c0_i32_1 = arith.constant 0 : i32
    return %c0_i32, %c0_i32_0 : i32, i32
  }
  func.func @transform_3(%arg0: i32, %arg1: i32) -> (i32, i32) {
    %c0_i32 = arith.constant 0 : i32
    %c0_i32_0 = arith.constant 0 : i32
    return %c0_i32, %arg1 : i32, i32
  }
  func.func @transform_4(%arg0: i32, %arg1: i32) -> (i32, i32) {
    %c0_i32 = arith.constant 0 : i32
    %c0_i32_0 = arith.constant 0 : i32
    return %c0_i32, %arg1 : i32, i32
  }
  func.func @transform_5(%arg0: i32, %arg1: i32) -> (i32, i32) {
    %c0_i32 = arith.constant 0 : i32
    return %arg0, %arg1 : i32, i32
  }
}

module attributes {stable_mosaic.version = 11 : i64} {
  func.func @kernel(%arg0: i32, %arg1: i32, %arg2: memref<16x32xbf16, #tpu.memory_space<vmem>>, %arg3: memref<32x32xbf16, #tpu.memory_space<vmem>>, %arg4: memref<1x32xf32, #tpu.memory_space<vmem>>, %arg5: memref<16x32xbf16, #tpu.memory_space<vmem>>, %arg6: memref<16x32xbf16, #tpu.memory_space<vmem>>) attributes {dimension_semantics = [#tpu.dimension_semantics<parallel>, #tpu.dimension_semantics<parallel>], iteration_bounds = array<i64: 1, 1>, scalar_prefetch = 0 : i64, scratch_operands = 0 : i64, tpu.core_type = #tpu.core_type<tc>, window_params = [{transform_indices = @transform_0, window_bounds = array<i64: 16, 32>}, {transform_indices = @transform_1, window_bounds = array<i64: 32, 32>}, {transform_indices = @transform_2, window_bounds = array<i64: 1, 32>}, {transform_indices = @transform_3, window_bounds = array<i64: 16, 32>}, {transform_indices = @transform_4, window_bounds = array<i64: 16, 32>}]} {
    %c0 = arith.constant 0 : index
    %c0_0 = arith.constant 0 : index
    %0 = vector.load %arg2[%c0, %c0_0] : memref<16x32xbf16, #tpu.memory_space<vmem>>, vector<16x32xbf16>
    %c0_1 = arith.constant 0 : index
    %c0_2 = arith.constant 0 : index
    %1 = vector.load %arg3[%c0_1, %c0_2] : memref<32x32xbf16, #tpu.memory_space<vmem>>, vector<32x32xbf16>
    %cst = arith.constant dense<0.000000e+00> : vector<16x32xf32>
    %2 = tpu.matmul %0, %1, %cst {dimension_numbers = #tpu.dot_dimension_numbers<[1], [0], [0], [1], [0, 0, 1, 1], [], []>} : vector<16x32xbf16>, vector<32x32xbf16>, vector<16x32xf32> -> vector<16x32xf32>
    %c0_3 = arith.constant 0 : index
    %c0_4 = arith.constant 0 : index
    %3 = vector.load %arg4[%c0_3, %c0_4] : memref<1x32xf32, #tpu.memory_space<vmem>>, vector<1x32xf32>
    %4 = vector.broadcast %3 : vector<1x32xf32> to vector<16x32xf32>
    %5 = arith.addf %2, %4 : vector<16x32xf32>
    %c0_5 = arith.constant 0 : index
    %c0_6 = arith.constant 0 : index
    %6 = vector.load %arg5[%c0_5, %c0_6] : memref<16x32xbf16, #tpu.memory_space<vmem>>, vector<16x32xbf16>
    %7 = arith.extf %6 : vector<16x32xbf16> to vector<16x32xf32>
    %8 = arith.addf %5, %7 : vector<16x32xf32>
    %9 = arith.truncf %8 : vector<16x32xf32> to vector<16x32xbf16>
    %c0_7 = arith.constant 0 : index
    %c0_8 = arith.constant 0 : index
    %10 = vector.load %arg6[%c0_7, %c0_8] : memref<16x32xbf16, #tpu.memory_space<vmem>>, vector<16x32xbf16>
    tpu.vector_store %arg6[%c0_7, %c0_8], %9 {strides = array<i32>} : memref<16x32xbf16, #tpu.memory_space<vmem>>, vector<16x32xbf16>,
    return
  }
  func.func @transform_0(%arg0: i32, %arg1: i32) -> (i32, i32) {
    %c0_i32 = arith.constant 0 : i32
    %c0_i32_0 = arith.constant 0 : i32
    return %arg0, %c0_i32 : i32, i32
  }
  func.func @transform_1(%arg0: i32, %arg1: i32) -> (i32, i32) {
    %c0_i32 = arith.constant 0 : i32
    %c0_i32_0 = arith.constant 0 : i32
    return %c0_i32, %arg1 : i32, i32
  }
  func.func @transform_2(%arg0: i32, %arg1: i32) -> (i32, i32) {
    %c0_i32 = arith.constant 0 : i32
    %c0_i32_0 = arith.constant 0 : i32
    return %c0_i32, %arg1 : i32, i32
  }
  func.func @transform_3(%arg0: i32, %arg1: i32) -> (i32, i32) {
    %c0_i32 = arith.constant 0 : i32
    return %arg0, %arg1 : i32, i32
  }
  func.func @transform_4(%arg0: i32, %arg1: i32) -> (i32, i32) {
    %c0_i32 = arith.constant 0 : i32
    return %arg0, %arg1 : i32, i32
  }
}

module attributes {stable_mosaic.version = 11 : i64} {
  func.func @kernel(%arg0: i32, %arg1: i32, %arg2: memref<16x128xbf16, #tpu.memory_space<vmem>>, %arg3: memref<128x32xbf16, #tpu.memory_space<vmem>>, %arg4: memref<1x32xf32, #tpu.memory_space<vmem>>, %arg5: memref<16x32xbf16, #tpu.memory_space<vmem>>, %arg6: memref<16x32xbf16, #tpu.memory_space<vmem>>) attributes {dimension_semantics = [#tpu.dimension_semantics<parallel>, #tpu.dimension_semantics<parallel>], iteration_bounds = array<i64: 1, 1>, scalar_prefetch = 0 : i64, scratch_operands = 0 : i64, tpu.core_type = #tpu.core_type<tc>, window_params = [{transform_indices = @transform_0, window_bounds = array<i64: 16, 128>}, {transform_indices = @transform_1, window_bounds = array<i64: 128, 32>}, {transform_indices = @transform_2, window_bounds = array<i64: 1, 32>}, {transform_indices = @transform_3, window_bounds = array<i64: 16, 32>}, {transform_indices = @transform_4, window_bounds = array<i64: 16, 32>}]} {
    %c0 = arith.constant 0 : index
    %c0_0 = arith.constant 0 : index
    %0 = vector.load %arg2[%c0, %c0_0] : memref<16x128xbf16, #tpu.memory_space<vmem>>, vector<16x128xbf16>
    %c0_1 = arith.constant 0 : index
    %c0_2 = arith.constant 0 : index
    %1 = vector.load %arg3[%c0_1, %c0_2] : memref<128x32xbf16, #tpu.memory_space<vmem>>, vector<128x32xbf16>
    %cst = arith.constant dense<0.000000e+00> : vector<16x32xf32>
    %2 = tpu.matmul %0, %1, %cst {dimension_numbers = #tpu.dot_dimension_numbers<[1], [0], [0], [1], [0, 0, 1, 1], [], []>} : vector<16x128xbf16>, vector<128x32xbf16>, vector<16x32xf32> -> vector<16x32xf32>
    %c0_3 = arith.constant 0 : index
    %c0_4 = arith.constant 0 : index
    %3 = vector.load %arg4[%c0_3, %c0_4] : memref<1x32xf32, #tpu.memory_space<vmem>>, vector<1x32xf32>
    %4 = vector.broadcast %3 : vector<1x32xf32> to vector<16x32xf32>
    %5 = arith.addf %2, %4 : vector<16x32xf32>
    %c0_5 = arith.constant 0 : index
    %c0_6 = arith.constant 0 : index
    %6 = vector.load %arg5[%c0_5, %c0_6] : memref<16x32xbf16, #tpu.memory_space<vmem>>, vector<16x32xbf16>
    %7 = arith.extf %6 : vector<16x32xbf16> to vector<16x32xf32>
    %8 = arith.addf %5, %7 : vector<16x32xf32>
    %9 = arith.truncf %8 : vector<16x32xf32> to vector<16x32xbf16>
    %c0_7 = arith.constant 0 : index
    %c0_8 = arith.constant 0 : index
    %10 = vector.load %arg6[%c0_7, %c0_8] : memref<16x32xbf16, #tpu.memory_space<vmem>>, vector<16x32xbf16>
    tpu.vector_store %arg6[%c0_7, %c0_8], %9 {strides = array<i32>} : memref<16x32xbf16, #tpu.memory_space<vmem>>, vector<16x32xbf16>,
    return
  }
  func.func @transform_0(%arg0: i32, %arg1: i32) -> (i32, i32) {
    %c0_i32 = arith.constant 0 : i32
    %c0_i32_0 = arith.constant 0 : i32
    return %arg0, %c0_i32 : i32, i32
  }
  func.func @transform_1(%arg0: i32, %arg1: i32) -> (i32, i32) {
    %c0_i32 = arith.constant 0 : i32
    %c0_i32_0 = arith.constant 0 : i32
    return %c0_i32, %arg1 : i32, i32
  }
  func.func @transform_2(%arg0: i32, %arg1: i32) -> (i32, i32) {
    %c0_i32 = arith.constant 0 : i32
    %c0_i32_0 = arith.constant 0 : i32
    return %c0_i32, %arg1 : i32, i32
  }
  func.func @transform_3(%arg0: i32, %arg1: i32) -> (i32, i32) {
    %c0_i32 = arith.constant 0 : i32
    return %arg0, %arg1 : i32, i32
  }
  func.func @transform_4(%arg0: i32, %arg1: i32) -> (i32, i32) {
    %c0_i32 = arith.constant 0 : i32
    return %arg0, %arg1 : i32, i32
  }
}

module attributes {stable_mosaic.version = 11 : i64} {
  func.func @kernel(%arg0: i32, %arg1: i32, %arg2: memref<16x32xbf16, #tpu.memory_space<vmem>>, %arg3: memref<1x32xf32, #tpu.memory_space<vmem>>, %arg4: memref<1x32xf32, #tpu.memory_space<vmem>>, %arg5: memref<128x32xbf16, #tpu.memory_space<vmem>>, %arg6: memref<16x128xf32, #tpu.memory_space<vmem>>, %arg7: memref<16x32xbf16, #tpu.memory_space<vmem>>) attributes {dimension_semantics = [#tpu.dimension_semantics<parallel>, #tpu.dimension_semantics<arbitrary>], iteration_bounds = array<i64: 1, 1>, scalar_prefetch = 0 : i64, scratch_operands = 1 : i64, tpu.core_type = #tpu.core_type<tc>, window_params = [{transform_indices = @transform_0, window_bounds = array<i64: 16, 32>}, {pipeline_mode = #tpu.pipeline_mode<synchronous>, transform_indices = @transform_1, window_bounds = array<i64: 1, 32>}, {pipeline_mode = #tpu.pipeline_mode<synchronous>, transform_indices = @transform_2, window_bounds = array<i64: 1, 32>}, {transform_indices = @transform_3, window_bounds = array<i64: 128, 32>}, {transform_indices = @transform_4, window_bounds = array<i64: 16, 128>}]} {
    %c0_i32 = arith.constant 0 : i32
    %0 = arith.cmpi eq, %arg1, %c0_i32 : i32
    %1 = arith.extui %0 : i1 to i32
    %c0_i32_0 = arith.constant 0 : i32
    %2 = arith.cmpi ne, %1, %c0_i32_0 : i32
    scf.if %2 {
      %c0_6 = arith.constant 0 : index
      %c0_7 = arith.constant 0 : index
      %7 = vector.load %arg2[%c0_6, %c0_7] : memref<16x32xbf16, #tpu.memory_space<vmem>>, vector<16x32xbf16>
      %8 = arith.extf %7 : vector<16x32xbf16> to vector<16x32xf32>
      %cst_8 = arith.constant dense<0.000000e+00> : vector<16xf32>
      %9 = vector.multi_reduction <add>, %8, %cst_8 [1] : vector<16x32xf32> to vector<16xf32>
      %10 = vector.shape_cast %9 : vector<16xf32> to vector<16x1xf32>
      %cst_9 = arith.constant 3.200000e+01 : f32
      %11 = vector.broadcast %cst_9 : f32 to vector<16x1xf32>
      %12 = arith.divf %10, %11 : vector<16x1xf32>
      %13 = vector.broadcast %12 : vector<16x1xf32> to vector<16x32xf32>
      %14 = arith.subf %8, %13 : vector<16x32xf32>
      %15 = arith.mulf %14, %14 : vector<16x32xf32>
      %cst_10 = arith.constant dense<0.000000e+00> : vector<16xf32>
      %16 = vector.multi_reduction <add>, %15, %cst_10 [1] : vector<16x32xf32> to vector<16xf32>
      %17 = vector.shape_cast %16 : vector<16xf32> to vector<16x1xf32>
      %cst_11 = arith.constant 3.200000e+01 : f32
      %18 = vector.broadcast %cst_11 : f32 to vector<16x1xf32>
      %19 = arith.divf %17, %18 : vector<16x1xf32>
      %20 = vector.broadcast %12 : vector<16x1xf32> to vector<16x32xf32>
      %21 = arith.subf %8, %20 : vector<16x32xf32>
      %cst_12 = arith.constant 9.99999974E-6 : f32
      %22 = vector.broadcast %cst_12 : f32 to vector<16x1xf32>
      %23 = arith.addf %19, %22 : vector<16x1xf32>
      %24 = math.rsqrt %23 : vector<16x1xf32>
      %25 = vector.broadcast %24 : vector<16x1xf32> to vector<16x32xf32>
      %26 = arith.mulf %21, %25 : vector<16x32xf32>
      %c0_13 = arith.constant 0 : index
      %c0_14 = arith.constant 0 : index
      %27 = vector.load %arg3[%c0_13, %c0_14] : memref<1x32xf32, #tpu.memory_space<vmem>>, vector<1x32xf32>
      %28 = vector.broadcast %27 : vector<1x32xf32> to vector<16x32xf32>
      %29 = arith.mulf %26, %28 : vector<16x32xf32>
      %c0_15 = arith.constant 0 : index
      %c0_16 = arith.constant 0 : index
      %30 = vector.load %arg4[%c0_15, %c0_16] : memref<1x32xf32, #tpu.memory_space<vmem>>, vector<1x32xf32>
      %31 = vector.broadcast %30 : vector<1x32xf32> to vector<16x32xf32>
      %32 = arith.addf %29, %31 : vector<16x32xf32>
      %33 = arith.truncf %32 : vector<16x32xf32> to vector<16x32xbf16>
      %c0_17 = arith.constant 0 : index
      %c0_18 = arith.constant 0 : index
      %34 = vector.load %arg7[%c0_17, %c0_18] : memref<16x32xbf16, #tpu.memory_space<vmem>>, vector<16x32xbf16>
      tpu.vector_store %arg7[%c0_17, %c0_18], %33 {strides = array<i32>} : memref<16x32xbf16, #tpu.memory_space<vmem>>, vector<16x32xbf16>,
    } else {
    }
    %c0 = arith.constant 0 : index
    %c0_1 = arith.constant 0 : index
    %3 = vector.load %arg7[%c0, %c0_1] : memref<16x32xbf16, #tpu.memory_space<vmem>>, vector<16x32xbf16>
    %c0_2 = arith.constant 0 : index
    %c0_3 = arith.constant 0 : index
    %4 = vector.load %arg5[%c0_2, %c0_3] : memref<128x32xbf16, #tpu.memory_space<vmem>>, vector<128x32xbf16>
    %cst = arith.constant dense<0.000000e+00> : vector<16x128xf32>
    %5 = tpu.matmul %3, %4, %cst {dimension_numbers = #tpu.dot_dimension_numbers<[1], [1], [0], [0], [0, 0, 1, 0], [], []>} : vector<16x32xbf16>, vector<128x32xbf16>, vector<16x128xf32> -> vector<16x128xf32>
    %c0_4 = arith.constant 0 : index
    %c0_5 = arith.constant 0 : index
    %6 = vector.load %arg6[%c0_4, %c0_5] : memref<16x128xf32, #tpu.memory_space<vmem>>, vector<16x128xf32>
    tpu.vector_store %arg6[%c0_4, %c0_5], %5 {strides = array<i32>} : memref<16x128xf32, #tpu.memory_space<vmem>>, vector<16x128xf32>,
    return
  }
  func.func @transform_0(%arg0: i32, %arg1: i32) -> (i32, i32) {
    %c0_i32 = arith.constant 0 : i32
    %c0_i32_0 = arith.constant 0 : i32
    return %arg0, %c0_i32 : i32, i32
  }
  func.func @transform_1(%arg0: i32, %arg1: i32) -> (i32, i32) {
    %c0_i32 = arith.constant 0 : i32
    %c0_i32_0 = arith.constant 0 : i32
    %c0_i32_1 = arith.constant 0 : i32
    return %c0_i32, %c0_i32_0 : i32, i32
  }
  func.func @transform_2(%arg0: i32, %arg1: i32) -> (i32, i32) {
    %c0_i32 = arith.constant 0 : i32
    %c0_i32_0 = arith.constant 0 : i32
    %c0_i32_1 = arith.constant 0 : i32
    return %c0_i32, %c0_i32_0 : i32, i32
  }
  func.func @transform_3(%arg0: i32, %arg1: i32) -> (i32, i32) {
    %c0_i32 = arith.constant 0 : i32
    %c0_i32_0 = arith.constant 0 : i32
    return %arg1, %c0_i32 : i32, i32
  }
  func.func @transform_4(%arg0: i32, %arg1: i32) -> (i32, i32) {
    %c0_i32 = arith.constant 0 : i32
    return %arg0, %arg1 : i32, i32
  }
}

</mosaic_0001>

<bundles_post_ra>
// kernel: gpt_forward.11
= control target key start
LH: loop header
LB: loop body
LE: loop exit
PB: predicated region body
PF: predicated region fallthrough
CT: control target
= control target key end

     0   :  { %vm29_vm0 = vcmask 261120   ;;  %v215_v16 = vmov 0.0   ;;  %vm216_vm1 = vmmov 0   ;;  %vm83_vm2 = vcmask 257024   ;;  %s276_s0 = inlined_call_operand.vmem [shape: bf16[16,32], index: 0, kind: input, shape index: {}]   ;;  %s277_s3 = inlined_call_operand.vmem [shape: bf16[32,96], index: 3, kind: input, shape index: {}]   ;;  %s278_s1 = inlined_call_operand.vmem [shape: f32[1,32], index: 1, kind: input, shape index: {}]   ;;  %s279_s2 = inlined_call_operand.vmem [shape: f32[1,32], index: 2, kind: input, shape index: {}]   ;;  %s280_s4 = inlined_call_operand.vmem [shape: f32[1,96], index: 4, kind: input, shape index: {}]   ;;  %s281_s5 = inlined_call_operand.vmem [shape: bf16[16,96], index: 5, kind: output, shape index: {}]  }
   0x1   :  { %v192_v0 = vld [vmem:[%s276_s0] sm:$0xff]   ;;  %v208_v15 = vld [vmem:[%s277_s3 + $0x8] sm:$0xff]   ;;  %198 = vmatprep.subr.bf16.mxu0 %v215_v16  ;;  %202 = vmatprep.mubr.msk.bf16.mxu0 %vm216_vm1, %v215_v16  ;;  %vm169_vm3 = vcmask 781312  }
   0x2   :  { %v193_v1 = vunpack.c.l.bf16 %v192_v0  ;;  %v194_v2 = vunpack.c.h.bf16 %v192_v0  ;;  %199 = vmatpush3.bf16.msra.mxu0 %v208_v15  ;;  %v209_v17 = vld [vmem:[%s277_s3] sm:$0xff]  }
   0x3   :  { %200 = vmatprep.subr.bf16.mxu0 %v215_v16  ;;  %v176_v25 = vld [vmem:[%s278_s1] ss:$0 sm:$0xff] }
   0x4   :  { %v30_v3 = vsel %vm29_vm0, %v193_v1, 0.0  ;;  %v33_v4 = vsel %vm29_vm0, %v194_v2, 0.0  ;;  %v177_v27 = vld [vmem:[%s279_s2] ss:$0 sm:$0xff] }
   0x5   :  { %31 = vadd.xlane.f32.xlu0 %v30_v3  ;;  %v180_v37 = vld [vmem:[%s280_s4] ss:$0 sm:$0xff] }
   0x6   :  { %201 = vmatpush3.bf16.msra.mxu0 %v209_v17 }
   0x9   :  { %34 = vadd.xlane.f32.xlu0 %v33_v4 }
  0x8e   :  { %v32_v5 = vpop.xlane.xlu0 %31 }
  0x8f   :  { %v37_v6 = vmul.f32 0.03125, %v32_v5 }
  0x91   :  { %v39_v7 = vsub.f32 %v193_v1, %v37_v6 }
  0x92   :  { %v35_v8 = vpop.xlane.xlu0 %34 }
  0x93   :  { %v38_v9 = vmul.f32 0.03125, %v35_v8  ;;  %v41_v10 = vmul.f32 %v39_v7, %v39_v7 }
  0x95   :  { %v40_v11 = vsub.f32 %v194_v2, %v38_v9  ;;  %v43_v12 = vsel %vm29_vm0, %v41_v10, 0.0 }
  0x96   :  { %44 = vadd.xlane.f32.xlu1 %v43_v12 }
  0x97   :  { %v42_v13 = vmul.f32 %v40_v11, %v40_v11 }
  0x99   :  { %v46_v14 = vsel %vm29_vm0, %v42_v13, 0.0 }
  0x9a   :  { %47 = vadd.xlane.f32.xlu1 %v46_v14 }
 0x11f   :  { %v45_v18 = vpop.xlane.xlu1 %44 }
 0x120   :  { %v49_v19 = vmul.f32 0.03125, %v45_v18 }
 0x122   :  { %v51_v20 = vadd.f32 1e-05, %v49_v19 }
 0x123   :  { %v48_v21 = vpop.xlane.xlu1 %47 }
 0x124   :  { %211 = vrsqrt.f32 %v51_v20  ;;  %v50_v22 = vmul.f32 0.03125, %v48_v21 }
 0x126   :  { %v52_v23 = vadd.f32 1e-05, %v50_v22 }
 0x128   :  { %213 = vrsqrt.f32 %v52_v23 }
 0x131   :  { %v212_v24 = vpop.eup %211 }
 0x132   :  { %v55_v26 = vmul.f32 %v212_v24, %v39_v7 }
 0x134   :  { %v64_v28 = vmul.f32 %v176_v25, %v55_v26 }
 0x135   :  { %v214_v29 = vpop.eup %213 }
 0x136   :  { %v73_v30 = vadd.f32 %v177_v27, %v64_v28  ;;  %v56_v31 = vmul.f32 %v214_v29, %v40_v11 }
 0x138   :  { %v187_v32 = vpack.c.bf16 %v73_v30, %v73_v30  ;;  %v65_v33 = vmul.f32 %v176_v25, %v56_v31 }
 0x13a   :  { %84 = vst.msk [vmem:[#allocation2] sm:$0xf] %vm83_vm2, %v187_v32  ;;  %v74_v34 = vadd.f32 %v177_v27, %v65_v33 }
 0x13c   :  { %v188_v35 = vpack.c.bf16 %v74_v34, %v74_v34 }
 0x13e   :  { %85 = vst.msk [vmem:[#allocation2 + $0x4] sm:$0xf] %vm83_vm2, %v188_v35 }
 0x145   :  { %v210_v36 = vld [vmem:[#allocation2] sm:$0xff]  }
 0x146   :  { %203 = vmatmul.mubr.msk.bf16.vlgmr.msra.gmra.mxu0 %vm29_vm0, %v210_v36 }
 0x206   :  { %v154_v38 = vpop.f32.mrf.mxu0 }
 0x207   :  { %v155_v39 = vadd.f32 %v180_v37, %v154_v38 }
 0x208   :  { %v204_v40 = vpop.f32.mrf.mxu0 }
 0x209   :  { %v189_v41 = vpack.c.bf16 %v155_v39, %v155_v39 }
 0x20a   :  { %v157_v42 = vpop.f32.mrf.mxu0 }
 0x20b   :  { %170 = vst.msk [vmem:[%s281_s5] sm:$0xf] %vm169_vm3, %v189_v41  ;;  %v158_v43 = vadd.f32 %v180_v37, %v157_v42 }
 0x20c   :  { %v205_v44 = vpop.f32.mrf.mxu0 }
 0x20d   :  { %v190_v45 = vpack.c.bf16 %v158_v43, %v158_v43 }
 0x20f   :  { %171 = vst.msk [vmem:[%s281_s5 + $0x4] sm:$0xf] %vm169_vm3, %v190_v45 }

// kernel: gpt_forward.13
= control target key start
LH: loop header
LB: loop body
LE: loop exit
PB: predicated region body
PF: predicated region fallthrough
CT: control target
= control target key end

     0   :  { %v143_v0 = vmov 0.0   ;;  %vm144_vm0 = vmmov 0   ;;  %vm48_vm1 = vcmask 261120   ;;  %vm107_vm2 = vcmask 257024   ;;  %s191_s1 = inlined_call_operand.vmem [shape: bf16[32,32], index: 1, kind: input, shape index: {}]   ;;  %s192_s0 = inlined_call_operand.vmem [shape: bf16[16,32], index: 0, kind: input, shape index: {}]   ;;  %s193_s3 = inlined_call_operand.vmem [shape: bf16[16,32], index: 3, kind: input, shape index: {}]   ;;  %s194_s2 = inlined_call_operand.vmem [shape: f32[1,32], index: 2, kind: input, shape index: {}]   ;;  %s195_s4 = inlined_call_operand.vmem [shape: bf16[16,32], index: 4, kind: output, shape index: {}]  }
   0x1   :  { %130 = vmatprep.subr.bf16.mxu0 %v143_v0  ;;  %v140_v1 = vld [vmem:[%s191_s1 + $0x8] sm:$0xff]   ;;  %134 = vmatprep.mubr.msk.bf16.mxu0 %vm144_vm0, %v143_v0  ;;  %v141_v2 = vld [vmem:[%s191_s1] sm:$0xff]  }
   0x2   :  { %131 = vmatpush3.bf16.msra.mxu0 %v140_v1  ;;  %v142_v3 = vld [vmem:[%s192_s0] sm:$0xff]  }
   0x3   :  { %132 = vmatprep.subr.bf16.mxu0 %v143_v0  ;;  %v124_v4 = vld [vmem:[%s193_s3] sm:$0xff]  }
   0x4   :  { %v114_v5 = vld [vmem:[%s194_s2] ss:$0 sm:$0xff]  ;;  %v125_v6 = vunpack.c.l.bf16 %v124_v4  ;;  %v126_v11 = vunpack.c.h.bf16 %v124_v4 }
   0x6   :  { %133 = vmatpush3.bf16.msra.mxu0 %v141_v2 }
   0x9   :  { %135 = vmatmul.mubr.msk.bf16.vlgmr.msra.gmra.mxu0 %vm48_vm1, %v142_v3 }
  0xc9   :  { %v86_v7 = vpop.f32.mrf.mxu0 }
  0xca   :  { %v87_v8 = vadd.f32 %v114_v5, %v86_v7 }
  0xcb   :  { %v136_v9 = vpop.f32.mrf.mxu0 }
  0xcc   :  { %v97_v10 = vadd.f32 %v125_v6, %v87_v8 }
  0xcd   :  { %v89_v12 = vpop.f32.mrf.mxu0 }
  0xce   :  { %v121_v13 = vpack.c.bf16 %v97_v10, %v97_v10  ;;  %v90_v14 = vadd.f32 %v114_v5, %v89_v12 }
  0xcf   :  { %v137_v15 = vpop.f32.mrf.mxu0 }
  0xd0   :  { %108 = vst.msk [vmem:[%s195_s4] sm:$0xf] %vm107_vm2, %v121_v13  ;;  %v98_v16 = vadd.f32 %v126_v11, %v90_v14 }
  0xd2   :  { %v122_v17 = vpack.c.bf16 %v98_v16, %v98_v16 }
  0xd4   :  { %109 = vst.msk [vmem:[%s195_s4 + $0x4] sm:$0xf] %vm107_vm2, %v122_v17 }

// kernel: gpt_forward.14
= control target key start
LH: loop header
LB: loop body
LE: loop exit
PB: predicated region body
PF: predicated region fallthrough
CT: control target
= control target key end

     0   :  { %vm29_vm0 = vcmask 261120   ;;  %v241_v16 = vmov 0.0   ;;  %vm242_vm1 = vmmov 0   ;;  %vm83_vm2 = vcmask 257024   ;;  %s299_s0 = inlined_call_operand.vmem [shape: bf16[16,32], index: 0, kind: input, shape index: {}]   ;;  %s300_s3 = inlined_call_operand.vmem [shape: bf16[32,128], index: 3, kind: input, shape index: {}]   ;;  %s301_s1 = inlined_call_operand.vmem [shape: f32[1,32], index: 1, kind: input, shape index: {}]   ;;  %s302_s2 = inlined_call_operand.vmem [shape: f32[1,32], index: 2, kind: input, shape index: {}]   ;;  %s303_s4 = inlined_call_operand.vmem [shape: f32[1,128], index: 4, kind: input, shape index: {}]   ;;  %s304_s5 = inlined_call_operand.vmem [shape: bf16[16,128], index: 5, kind: output, shape index: {}]  }
   0x1   :  { %v209_v0 = vld [vmem:[%s299_s0] sm:$0xff]   ;;  %v230_v15 = vld [vmem:[%s300_s3 + $0x8] sm:$0xff]   ;;  %220 = vmatprep.subr.bf16.mxu0 %v241_v16  ;;  %224 = vmatprep.mubr.msk.bf16.mxu0 %vm242_vm1, %v241_v16 }
   0x2   :  { %v210_v1 = vunpack.c.l.bf16 %v209_v0  ;;  %v211_v2 = vunpack.c.h.bf16 %v209_v0  ;;  %221 = vmatpush3.bf16.msra.mxu0 %v230_v15  ;;  %v231_v17 = vld [vmem:[%s300_s3] sm:$0xff]  }
   0x3   :  { %222 = vmatprep.subr.bf16.mxu0 %v241_v16  ;;  %v193_v25 = vld [vmem:[%s301_s1] ss:$0 sm:$0xff] }
   0x4   :  { %v30_v3 = vsel %vm29_vm0, %v210_v1, 0.0  ;;  %v33_v4 = vsel %vm29_vm0, %v211_v2, 0.0  ;;  %v194_v27 = vld [vmem:[%s302_s2] ss:$0 sm:$0xff] }
   0x5   :  { %31 = vadd.xlane.f32.xlu0 %v30_v3  ;;  %v197_v37 = vld [vmem:[%s303_s4] ss:$0 sm:$0xff] }
   0x6   :  { %223 = vmatpush3.bf16.msra.mxu0 %v231_v17 }
   0x9   :  { %34 = vadd.xlane.f32.xlu0 %v33_v4 }
  0x8e   :  { %v32_v5 = vpop.xlane.xlu0 %31 }
  0x8f   :  { %v37_v6 = vmul.f32 0.03125, %v32_v5 }
  0x91   :  { %v39_v7 = vsub.f32 %v210_v1, %v37_v6 }
  0x92   :  { %v35_v8 = vpop.xlane.xlu0 %34 }
  0x93   :  { %v38_v9 = vmul.f32 0.03125, %v35_v8  ;;  %v41_v10 = vmul.f32 %v39_v7, %v39_v7 }
  0x95   :  { %v40_v11 = vsub.f32 %v211_v2, %v38_v9  ;;  %v43_v12 = vsel %vm29_vm0, %v41_v10, 0.0 }
  0x96   :  { %44 = vadd.xlane.f32.xlu1 %v43_v12 }
  0x97   :  { %v42_v13 = vmul.f32 %v40_v11, %v40_v11 }
  0x99   :  { %v46_v14 = vsel %vm29_vm0, %v42_v13, 0.0 }
  0x9a   :  { %47 = vadd.xlane.f32.xlu1 %v46_v14 }
 0x11f   :  { %v45_v18 = vpop.xlane.xlu1 %44 }
 0x120   :  { %v49_v19 = vmul.f32 0.03125, %v45_v18 }
 0x122   :  { %v51_v20 = vadd.f32 1e-05, %v49_v19 }
 0x123   :  { %v48_v21 = vpop.xlane.xlu1 %47 }
 0x124   :  { %233 = vrsqrt.f32 %v51_v20  ;;  %v50_v22 = vmul.f32 0.03125, %v48_v21 }
 0x126   :  { %v52_v23 = vadd.f32 1e-05, %v50_v22 }
 0x128   :  { %235 = vrsqrt.f32 %v52_v23 }
 0x131   :  { %v234_v24 = vpop.eup %233 }
 0x132   :  { %v55_v26 = vmul.f32 %v234_v24, %v39_v7 }
 0x134   :  { %v64_v28 = vmul.f32 %v193_v25, %v55_v26 }
 0x135   :  { %v236_v29 = vpop.eup %235 }
 0x136   :  { %v73_v30 = vadd.f32 %v194_v27, %v64_v28  ;;  %v56_v31 = vmul.f32 %v236_v29, %v40_v11 }
 0x138   :  { %v204_v32 = vpack.c.bf16 %v73_v30, %v73_v30  ;;  %v65_v33 = vmul.f32 %v193_v25, %v56_v31 }
 0x13a   :  { %84 = vst.msk [vmem:[#allocation2] sm:$0xf] %vm83_vm2, %v204_v32  ;;  %v74_v34 = vadd.f32 %v194_v27, %v65_v33 }
 0x13c   :  { %v205_v35 = vpack.c.bf16 %v74_v34, %v74_v34 }
 0x13e   :  { %85 = vst.msk [vmem:[#allocation2 + $0x4] sm:$0xf] %vm83_vm2, %v205_v35 }
 0x145   :  { %v232_v36 = vld [vmem:[#allocation2] sm:$0xff]  }
 0x146   :  { %225 = vmatmul.mubr.msk.bf16.vlgmr.msra.gmra.mxu0 %vm29_vm0, %v232_v36 }
 0x206   :  { %v154_v38 = vpop.f32.mrf.mxu0 }
 0x207   :  { %v155_v39 = vadd.f32 %v197_v37, %v154_v38 }
 0x208   :  { %v226_v40 = vpop.f32.mrf.mxu0 }
 0x209   :  { %v163_v41 = vmul.f32 0.044715, %v155_v39  ;;  %v161_v57 = vmul.f32 0.5, %v155_v39 }
 0x20a   :  { %v157_v42 = vpop.f32.mrf.mxu0 }
 0x20b   :  { %v165_v43 = vmul.f32 %v163_v41, %v155_v39  ;;  %v158_v44 = vadd.f32 %v197_v37, %v157_v42 }
 0x20c   :  { %v227_v45 = vpop.f32.mrf.mxu0 }
 0x20d   :  { %v167_v46 = vmul.f32 %v165_v43, %v155_v39  ;;  %v164_v47 = vmul.f32 0.044715, %v158_v44  ;;  %v162_v58 = vmul.f32 0.5, %v158_v44 }
 0x20f   :  { %v169_v48 = vadd.f32 %v167_v46, %v155_v39  ;;  %v166_v49 = vmul.f32 %v164_v47, %v158_v44 }
 0x211   :  { %v171_v50 = vmul.f32 0.7978846, %v169_v48  ;;  %v168_v51 = vmul.f32 %v166_v49, %v158_v44 }
 0x213   :  { %237 = vtanh.f32 %v171_v50  ;;  %v170_v52 = vadd.f32 %v168_v51, %v158_v44 }
 0x215   :  { %v172_v53 = vmul.f32 0.7978846, %v170_v52 }
 0x217   :  { %239 = vtanh.f32 %v172_v53 }
 0x220   :  { %v238_v54 = vpop.eup %237 }
 0x221   :  { %v175_v55 = vadd.f32 1.0, %v238_v54 }
 0x223   :  { %v177_v60 = vmul.f32 %v175_v55, %v161_v57 }
 0x224   :  { %v240_v56 = vpop.eup %239 }
 0x225   :  { %v176_v59 = vadd.f32 1.0, %v240_v56 }
 0x227   :  { %v178_v61 = vmul.f32 %v176_v59, %v162_v58 }
 0x229   :  { %v215_v62 = vpack.c.bf16 %v178_v61, %v177_v60 }
 0x22b   :  { %216 = vst [vmem:[%s304_s5] sm:$0xff] %v215_v62  }

// kernel: gpt_forward.12
= control target key start
LH: loop header
LB: loop body
LE: loop exit
PB: predicated region body
PF: predicated region fallthrough
CT: control target
= control target key end

     0   :  { %s505_s6 = smov 0   ;;  %s548_s0 = inlined_call_operand.vmem [shape: bf16[2,8,96], index: 0, kind: input, shape index: {}]   ;;  %s549_s1 = inlined_call_operand.vmem [shape: bf16[2,8,32], index: 1, kind: output, shape index: {}]  }
   0x1 LB: > { %s408_s7 = sadd.s32 4294967295, %s485_s6   ;;  %p412_p0 = scmp.ge.s32.totalorder %s485_s6, 1  ;;  %s485_s6 = sphi %s505_s6, %s11_s6  }
   0x2   : > { %p86_p1 = scmp.lt.s32.totalorder %s485_s6, 3 }
   0x4   : > { %p87_p2 = pnand %p412_p0, %p86_p1 }
   0x5   : > { %p104_p3 = scmp.lt.s32.totalorder (!%p87_p2), %s408_s7, 1  ;;  %s489_s12 = smov (!%p87_p2), 96  }
   0x6   : > { %90 = sbr.rel (%p87_p2) target bundleno = 1172 (0x494), region = 24  ;;  %s490_s13 = smov (!%p87_p2), 64  }
   0x7   : > { %s491_s14 = smov (!%p87_p2), 80   ;;  %s492_s15 = smov (!%p87_p2), 112  }
   0x8   : > { %s493_s16 = smov (!%p87_p2), 48   ;;  %s494_s17 = smov (!%p87_p2), 16  }
   0xb   : > { %v487_v0 = vmov 0.0   ;;  %vm488_vm0 = vmmov 0   ;;  %s551_s7 = smov (!%p104_p3, %s408_s7), 1  ;;  %vm124_vm1 = vcmask 130048   ;;  %v114_v5 = vlaneseq }
   0xc   : > { %430 = vmatprep.subr.bf16.mxu0 %v487_v0  ;;  %432 = vmatprep.mubr.msk.bf16.mxu0 %vm488_vm0, %v487_v0  ;;  %s413_s8 = sshll.u32 %s551_s7, 2  ;;  %vm173_vm3 = vcmask 64512   ;;  %vm190_vm4 = vcmask 1043456   ;;  %vm353_vm5 = vcmask 257024  }
   0xd   : > { %436 = vmatprep.subr.bf16.mxu1 %v487_v0  ;;  %438 = vmatprep.mubr.msk.bf16.mxu1 %vm488_vm0, %v487_v0  ;;  %s107_s11 = scalar_lea.vmem %s548_s0, %s413_s8  ;;  %v115_v6 = vshrl.u32 %v114_v5, 7  ;;  %v117_v7 = vand.u32 127, %v114_v5  ;;  %s111_s20 = scalar_lea.vmem %s549_s1, %s413_s8 }
   0xe   : > { %v113_v1 = vld [vmem:[%s107_s11] sm:$0xf] }
   0xf   : > { %v415_v2 = vcombine.low %v113_v1, %v113_v1  ;;  %vm118_vm2 = vcmp.le.s32.totalorder %v117_v7, %v115_v6 }
  0x11   : > { %122 = vrot.lane.b32.xlu0 %v415_v2, %s489_s12  ;;  %185 = vrot.lane.b32.xlu1 %v415_v2, %s490_s13 }
  0x15   : > { %237 = vrot.lane.b32.xlu1 %v415_v2, %s491_s14 }
  0x19   : > { %235 = vrot.lane.b32.xlu1 %v415_v2, %s492_s15 }
  0x83   : > { %v123_v3 = vpop.permute.xlu0 %122  ;;  %v186_v15 = vpop.permute.xlu1 %185 }
  0x84   : > { %v129_v4 = vsel %vm124_vm1, %v123_v3, 0  ;;  %v192_v16 = vsel %vm190_vm4, %v186_v15, 0 }
  0x85   : > { %431 = vmatpush3.bf16.xpose.msra.mxu0 %v129_v4  ;;  %437 = vmatpush3.bf16.msra.mxu1 %v192_v16 }
  0x86   : > { %448 = vmatprep.subr.bf16.mxu0 %v487_v0  ;;  %442 = vmatprep.subr.bf16.mxu1 %v487_v0 }
  0x87   : > { %v238_v20 = vpop.permute.xlu1 %237 }
  0x88   : > { %v243_v22 = vsel %vm124_vm1, %v238_v20, 0 }
  0x8b   : > { %v236_v24 = vpop.permute.xlu1 %235 }
  0x8c   : > { %433 = vmatmul.mubr.msk.bf16.vlgmr.msra.gmra.mxu0 %vm124_vm1, %v113_v1 }
  0x8d   : > { %450 = vmatprep.mubr.msk.bf16.mxu0 %vm488_vm0, %v487_v0 }
 0x14c   : > { %v165_v8 = vpop.f32.mrf.mxu0 }
 0x14d   : > { %v171_v9 = vmul.f32 0.25, %v165_v8 }
 0x14e   : > { %v434_v10 = vpop.f32.mrf.mxu0 }
 0x14f   : > { %v172_v11 = vsel %vm118_vm2, %v171_v9, -inf }
 0x150   : > { %v168_v12 = vpop.f32.mrf.mxu0  ;;  %v174_v13 = vsel %vm173_vm3, %v172_v11, -inf }
 0x151   : > { %175 = vmax.xlane.f32.xlu0 %v174_v13 }
 0x152   : > { %v435_v14 = vpop.f32.mrf.mxu0 }
 0x167   : > { %298 = vrot.lane.b32.xlu0 %v415_v2, %s493_s16 }
 0x1da   : > { %v176_v17 = vpop.xlane.xlu0 %175 }
 0x1db   : > { %v177_v18 = vsub.f32 %v172_v11, %v176_v17 }
 0x1dd   : > { %v178_v19 = vmul.f32 1.442695, %v177_v18 }
 0x1de   : > { %v299_v36 = vpop.permute.xlu0 %298 }
 0x1df   : > { %471 = vpow2.f32 %v178_v19  ;;  %v304_v37 = vsel %vm190_vm4, %v299_v36, 0 }
 0x1e0   : > { %449 = vmatpush3.bf16.msra.mxu0 %v304_v37 }
 0x1ec   : > { %v472_v21 = vpop.eup %471 }
 0x1ed   : > { %v184_v23 = vpack.c.bf16 %v472_v21, %v472_v21  ;;  %v180_v44 = vsel %vm173_vm3, %v472_v21, 0.0 }
 0x1ef   : > { %439 = vmatmul.mubr.msk.bf16.vlgmr.msra.gmra.mxu1 %vm173_vm3, %v184_v23 }
 0x1f0   : > { %443 = vmatpush3.bf16.xpose.msra.mxu1 %v243_v22  ;;  %444 = vmatprep.mubr.msk.bf16.mxu1 %vm488_vm0, %v487_v0 }
 0x1f7   : > { %445 = vmatmul.mubr.msk.bf16.vlgmr.msra.gmra.mxu1 %vm124_vm1, %v236_v24 }
 0x2af   : > { %v228_v25 = vpop.f32.mrf.mxu1 }
 0x2b1   : > { %v440_v26 = vpop.f32.mrf.mxu1 }
 0x2b3   : > { %v231_v27 = vpop.f32.mrf.mxu1 }
 0x2b5   : > { %v441_v28 = vpop.f32.mrf.mxu1 }
 0x2b7   : > { %v279_v29 = vpop.f32.mrf.mxu1 }
 0x2b8   : > { %v285_v30 = vmul.f32 0.25, %v279_v29 }
 0x2b9   : > { %v446_v31 = vpop.f32.mrf.mxu1 }
 0x2ba   : > { %v286_v32 = vsel %vm118_vm2, %v285_v30, -inf }
 0x2bb   : > { %v282_v33 = vpop.f32.mrf.mxu1  ;;  %v287_v34 = vsel %vm173_vm3, %v286_v32, -inf }
 0x2bc   : > { %288 = vmax.xlane.f32.xlu1 %v287_v34 }
 0x2bd   : > { %v447_v35 = vpop.f32.mrf.mxu1 }
 0x345   : > { %v289_v38 = vpop.xlane.xlu1 %288 }
 0x346   : > { %v290_v39 = vsub.f32 %v286_v32, %v289_v38 }
 0x348   : > { %v291_v40 = vmul.f32 1.442695, %v290_v39 }
 0x34a   : > { %473 = vpow2.f32 %v291_v40 }
 0x357   : > { %v474_v41 = vpop.eup %473 }
 0x358   : > { %v293_v42 = vsel %vm173_vm3, %v474_v41, 0.0  ;;  %v297_v43 = vpack.c.bf16 %v474_v41, %v474_v41 }
 0x359   : > { %294 = vadd.xlane.f32.xlu1 %v293_v42 }
 0x35a   : > { %451 = vmatmul.mubr.msk.bf16.vlgmr.msra.gmra.mxu0 %vm173_vm3, %v297_v43 }
 0x35d   : > { %181 = vadd.xlane.f32.xlu1 %v180_v44 }
 0x3e2   : > { %v295_v45 = vpop.xlane.xlu1 %294 }
 0x3e3   : > { %475 = vrcp.f32 %v295_v45 }
 0x3e6   : > { %v182_v52 = vpop.xlane.xlu1 %181 }
 0x3e7   : > { %477 = vrcp.f32 %v182_v52 }
 0x3f0   : > { %v476_v46 = vpop.eup %475 }
 0x3f4   : > { %v478_v53 = vpop.eup %477 }
 0x3f5   : > { %v234_v54 = vmul.f32 %v478_v53, %v228_v25 }
 0x41a   : > { %v340_v47 = vpop.f32.mrf.mxu0 }
 0x41b   : > { %v346_v48 = vmul.f32 %v476_v46, %v340_v47 }
 0x41c   : > { %v452_v49 = vpop.f32.mrf.mxu0 }
 0x41d   : > { %348 = vrot.lane.b32.xlu1 %v346_v48, %s494_s17 }
 0x41e   : > { %v343_v50 = vpop.f32.mrf.mxu0 }
 0x420   : > { %v453_v51 = vpop.f32.mrf.mxu0 }
 0x48f   : > { %v349_v55 = vpop.permute.xlu1 %348 }
 0x490   : > { %v351_v56 = vsel %vm124_vm1, %v234_v54, %v349_v55 }
 0x491   : > { %v352_v57 = vpack.c.bf16 %v351_v56, %v351_v56 }
 0x493   : > { %354 = vst.msk [vmem:[%s111_s20] sm:$0xf] %vm353_vm5, %v352_v57 }
 0x494 PF: > { %s11_s6 = sadd.s32 1, %s485_s6  }
 0x495   : > { %p8_p4 = scmp.ge.s32.totalorder %s11_s6, 4  }
 0x497   :  { %10 = sbr.rel (!%p8_p4) target bundleno = 1 (0x1), region = 54 }

// kernel: gpt_forward.15
= control target key start
LH: loop header
LB: loop body
LE: loop exit
PB: predicated region body
PF: predicated region fallthrough
CT: control target
= control target key end

     0   :  { %v217_v0 = vmov 0.0   ;;  %vm218_vm0 = vmmov 0   ;;  %vm152_vm1 = vcmask 257024   ;;  %s283_s1 = inlined_call_operand.vmem [shape: bf16[128,32], index: 1, kind: input, shape index: {}]   ;;  %s284_s0 = inlined_call_operand.vmem [shape: bf16[16,128], index: 0, kind: input, shape index: {}]   ;;  %s285_s3 = inlined_call_operand.vmem [shape: bf16[16,32], index: 3, kind: input, shape index: {}]   ;;  %s286_s2 = inlined_call_operand.vmem [shape: f32[1,32], index: 2, kind: input, shape index: {}]   ;;  %s287_s4 = inlined_call_operand.vmem [shape: bf16[16,32], index: 4, kind: output, shape index: {}]  }
   0x1   :  { %186 = vmatprep.subr.bf16.mxu0 %v217_v0  ;;  %v208_v1 = vld [vmem:[%s283_s1 + $0x38] sm:$0xff]   ;;  %202 = vmatprep.mubr.msk.bf16.mxu0 %vm218_vm0, %v217_v0  ;;  %v209_v2 = vld [vmem:[%s283_s1 + $0x30] sm:$0xff]   ;;  %v210_v3 = vld [vmem:[%s283_s1 + $0x28] sm:$0xff]  }
   0x2   :  { %187 = vmatpush3.bf16.msra.mxu0 %v208_v1  ;;  %v211_v4 = vld [vmem:[%s283_s1 + $0x20] sm:$0xff]   ;;  %v212_v5 = vld [vmem:[%s283_s1 + $0x18] sm:$0xff]   ;;  %v213_v6 = vld [vmem:[%s283_s1 + $0x10] sm:$0xff]  }
   0x3   :  { %188 = vmatprep.subr.bf16.mxu0 %v217_v0  ;;  %v214_v7 = vld [vmem:[%s283_s1 + $0x8] sm:$0xff]   ;;  %v215_v8 = vld [vmem:[%s283_s1] sm:$0xff]  }
   0x4   :  { %v216_v9 = vld [vmem:[%s284_s0] sm:$0xff]  }
   0x5   :  { %v174_v10 = vld [vmem:[%s285_s3] sm:$0xff]  }
   0x6   :  { %189 = vmatpush3.bf16.msra.mxu0 %v209_v2  ;;  %v159_v11 = vld [vmem:[%s286_s2] ss:$0 sm:$0xff]  ;;  %v175_v12 = vunpack.c.l.bf16 %v174_v10  ;;  %v176_v17 = vunpack.c.h.bf16 %v174_v10 }
   0x7   :  { %190 = vmatprep.subr.bf16.mxu0 %v217_v0 }
   0xa   :  { %191 = vmatpush3.bf16.msra.mxu0 %v210_v3 }
   0xb   :  { %192 = vmatprep.subr.bf16.mxu0 %v217_v0 }
   0xe   :  { %193 = vmatpush3.bf16.msra.mxu0 %v211_v4 }
   0xf   :  { %194 = vmatprep.subr.bf16.mxu0 %v217_v0 }
  0x12   :  { %195 = vmatpush3.bf16.msra.mxu0 %v212_v5 }
  0x13   :  { %196 = vmatprep.subr.bf16.mxu0 %v217_v0 }
  0x16   :  { %197 = vmatpush3.bf16.msra.mxu0 %v213_v6 }
  0x17   :  { %198 = vmatprep.subr.bf16.mxu0 %v217_v0 }
  0x1a   :  { %199 = vmatpush3.bf16.msra.mxu0 %v214_v7 }
  0x1b   :  { %200 = vmatprep.subr.bf16.mxu0 %v217_v0 }
  0x1e   :  { %201 = vmatpush3.bf16.msra.mxu0 %v215_v8 }
  0x21   :  { %203 = vmatmul.mubr.bf16.vlgmr.msra.gmra.mxu0 %v216_v9 }
  0xe1   :  { %v131_v13 = vpop.f32.mrf.mxu0 }
  0xe2   :  { %v132_v14 = vadd.f32 %v159_v11, %v131_v13 }
  0xe3   :  { %v204_v15 = vpop.f32.mrf.mxu0 }
  0xe4   :  { %v142_v16 = vadd.f32 %v175_v12, %v132_v14 }
  0xe5   :  { %v134_v18 = vpop.f32.mrf.mxu0 }
  0xe6   :  { %v171_v19 = vpack.c.bf16 %v142_v16, %v142_v16  ;;  %v135_v20 = vadd.f32 %v159_v11, %v134_v18 }
  0xe7   :  { %v205_v21 = vpop.f32.mrf.mxu0 }
  0xe8   :  { %153 = vst.msk [vmem:[%s287_s4] sm:$0xf] %vm152_vm1, %v171_v19  ;;  %v143_v22 = vadd.f32 %v176_v17, %v135_v20 }
  0xea   :  { %v172_v23 = vpack.c.bf16 %v143_v22, %v143_v22 }
  0xec   :  { %154 = vst.msk [vmem:[%s287_s4 + $0x4] sm:$0xf] %vm152_vm1, %v172_v23 }

// kernel: gpt_forward.21
= control target key start
LH: loop header
LB: loop body
LE: loop exit
PB: predicated region body
PF: predicated region fallthrough
CT: control target
= control target key end

     0   :  { %vm27_vm0 = vcmask 261120   ;;  %s402_s0 = inlined_call_operand.vmem [shape: bf16[16,32], index: 0, kind: input, shape index: {}]   ;;  %s403_s1 = inlined_call_operand.vmem [shape: f32[1,32], index: 1, kind: input, shape index: {}]   ;;  %s404_s2 = inlined_call_operand.vmem [shape: f32[1,32], index: 2, kind: input, shape index: {}]   ;;  %s405_s3 = inlined_call_operand.vmem [shape: bf16[128,32], index: 3, kind: input, shape index: {}]   ;;  %s406_s4 = inlined_call_operand.hbm [shape: f32[16,128], index: 4, kind: output, shape index: {}]  }
   0x1   :  { %v251_v0 = vld [vmem:[%s402_s0] sm:$0xff]  }
   0x2   :  { %v252_v1 = vunpack.c.l.bf16 %v251_v0  ;;  %v253_v2 = vunpack.c.h.bf16 %v251_v0 }
   0x4   :  { %v28_v3 = vsel %vm27_vm0, %v252_v1, 0.0  ;;  %v31_v4 = vsel %vm27_vm0, %v253_v2, 0.0 }
   0x5   :  { %29 = vadd.xlane.f32.xlu0 %v28_v3 }
   0x6   :  { %9 = vsyncpa [#allocation4], 0  ;;  %v288_v5 = vld [vmem:[%s405_s3 + $0x38] sm:$0xff]   ;;  %v323_v6 = vmov 0.0   ;;  %v289_v8 = vld [vmem:[%s405_s3 + $0x30] sm:$0xff]   ;;  %vm324_vm1 = vmmov 0  }
   0x7   :  { %263 = vmatprep.subr.bf16.mxu0 %v323_v6  ;;  %v173_v7 = vsel %vm27_vm0, %v288_v5, 0  ;;  %v170_v9 = vsel %vm27_vm0, %v289_v8, 0  ;;  %v290_v10 = vld [vmem:[%s405_s3 + $0x28] sm:$0xff]   ;;  %v291_v22 = vld [vmem:[%s405_s3 + $0x20] sm:$0xff]   ;;  %v292_v24 = vld [vmem:[%s405_s3 + $0x18] sm:$0xff]   ;;  %279 = vmatprep.mubr.msk.bf16.mxu0 %vm324_vm1, %v323_v6  ;;  %vm81_vm2 = vcmask 257024  }
   0x8   :  { %264 = vmatpush3.bf16.xpose.msra.mxu0 %v173_v7  ;;  %v167_v11 = vsel %vm27_vm0, %v290_v10, 0  ;;  %v164_v23 = vsel %vm27_vm0, %v291_v22, 0  ;;  %v161_v25 = vsel %vm27_vm0, %v292_v24, 0  ;;  %v293_v26 = vld [vmem:[%s405_s3 + $0x10] sm:$0xff]   ;;  %v294_v28 = vld [vmem:[%s405_s3 + $0x8] sm:$0xff]   ;;  %v295_v30 = vld [vmem:[%s405_s3] sm:$0xff]  }
   0x9   :  { %32 = vadd.xlane.f32.xlu0 %v31_v4  ;;  %265 = vmatprep.subr.bf16.mxu0 %v323_v6  ;;  %v158_v27 = vsel %vm27_vm0, %v293_v26, 0  ;;  %v155_v29 = vsel %vm27_vm0, %v294_v28, 0  ;;  %v152_v31 = vsel %vm27_vm0, %v295_v30, 0  ;;  %v234_v39 = vld [vmem:[%s403_s1] ss:$0 sm:$0xff]  ;;  %s325_s1 = smov [#allocation3]  }
   0xa   :  { %v235_v41 = vld [vmem:[%s404_s2] ss:$0 sm:$0xff]  ;;  %s223_s9 = sshll.u32 %s325_s1, 4  ;;  %s224_s9 = int_to_ptr.vmem [resolvable:$true] %s223_s9 }
   0xb   :  { %s301_s2 = scalar_lea.vmem %s224_s9, 256  ;;  %p306_p1 = scmp.lt.s32.totalorder %s224_s9, %s224_s9 }
   0xc   :  { %p302_p0 = scmp.ne.s32.totalorder %s224_s9, %s301_s2  ;;  %p307_p2 = scmp.lt.s32.totalorder %s301_s2, %s301_s2 }
   0xe   :  { %p308_p3 = por %p307_p2, %p306_p1 }
  0x10   :  { %266 = vmatpush3.bf16.xpose.msra.mxu0 %v170_v9  ;;  %p309_p4 = pnand %p308_p3, %p302_p0 }
  0x11   :  { %267 = vmatprep.subr.bf16.mxu0 %v323_v6 }
  0x18   :  { %268 = vmatpush3.bf16.xpose.msra.mxu0 %v167_v11 }
  0x19   :  { %269 = vmatprep.subr.bf16.mxu0 %v323_v6 }
  0x20   :  { %270 = vmatpush3.bf16.xpose.msra.mxu0 %v164_v23 }
  0x21   :  { %271 = vmatprep.subr.bf16.mxu0 %v323_v6 }
  0x28   :  { %272 = vmatpush3.bf16.xpose.msra.mxu0 %v161_v25 }
  0x29   :  { %273 = vmatprep.subr.bf16.mxu0 %v323_v6 }
  0x30   :  { %274 = vmatpush3.bf16.xpose.msra.mxu0 %v158_v27 }
  0x31   :  { %275 = vmatprep.subr.bf16.mxu0 %v323_v6 }
  0x38   :  { %276 = vmatpush3.bf16.xpose.msra.mxu0 %v155_v29 }
  0x39   :  { %277 = vmatprep.subr.bf16.mxu0 %v323_v6 }
  0x40   :  { %278 = vmatpush3.bf16.xpose.msra.mxu0 %v152_v31 }
  0x8e   :  { %v30_v12 = vpop.xlane.xlu0 %29 }
  0x8f   :  { %v35_v13 = vmul.f32 0.03125, %v30_v12 }
  0x91   :  { %v37_v14 = vsub.f32 %v252_v1, %v35_v13 }
  0x92   :  { %v33_v15 = vpop.xlane.xlu0 %32 }
  0x93   :  { %v36_v16 = vmul.f32 0.03125, %v33_v15  ;;  %v39_v17 = vmul.f32 %v37_v14, %v37_v14 }
  0x95   :  { %v38_v18 = vsub.f32 %v253_v2, %v36_v16  ;;  %v41_v19 = vsel %vm27_vm0, %v39_v17, 0.0 }
  0x96   :  { %42 = vadd.xlane.f32.xlu1 %v41_v19 }
  0x97   :  { %v40_v20 = vmul.f32 %v38_v18, %v38_v18 }
  0x99   :  { %v44_v21 = vsel %vm27_vm0, %v40_v20, 0.0 }
  0x9a   :  { %45 = vadd.xlane.f32.xlu1 %v44_v21 }
 0x11f   :  { %v43_v32 = vpop.xlane.xlu1 %42 }
 0x120   :  { %v47_v33 = vmul.f32 0.03125, %v43_v32 }
 0x122   :  { %v49_v34 = vadd.f32 1e-05, %v47_v33 }
 0x123   :  { %v46_v35 = vpop.xlane.xlu1 %45 }
 0x124   :  { %297 = vrsqrt.f32 %v49_v34  ;;  %v48_v36 = vmul.f32 0.03125, %v46_v35 }
 0x126   :  { %v50_v37 = vadd.f32 1e-05, %v48_v36 }
 0x128   :  { %299 = vrsqrt.f32 %v50_v37 }
 0x131   :  { %v298_v38 = vpop.eup %297 }
 0x132   :  { %v53_v40 = vmul.f32 %v298_v38, %v37_v14 }
 0x134   :  { %v62_v42 = vmul.f32 %v234_v39, %v53_v40 }
 0x135   :  { %v300_v43 = vpop.eup %299 }
 0x136   :  { %v71_v44 = vadd.f32 %v235_v41, %v62_v42  ;;  %v54_v45 = vmul.f32 %v300_v43, %v38_v18 }
 0x138   :  { %v248_v46 = vpack.c.bf16 %v71_v44, %v71_v44  ;;  %v63_v47 = vmul.f32 %v234_v39, %v54_v45 }
 0x13a   :  { %82 = vst.msk [vmem:[#allocation2] sm:$0xf] %vm81_vm2, %v248_v46  ;;  %v72_v48 = vadd.f32 %v235_v41, %v63_v47 }
 0x13c   :  { %v249_v49 = vpack.c.bf16 %v72_v48, %v72_v48 }
 0x13e   :  { %83 = vst.msk [vmem:[#allocation2 + $0x4] sm:$0xf] %vm81_vm2, %v249_v49 }
 0x145   :  { %v296_v50 = vld [vmem:[#allocation2] sm:$0xff]  }
 0x146   :  { %280 = vmatmul.mubr.msk.bf16.vlgmr.msra.gmra.mxu0 %vm27_vm0, %v296_v50 }
 0x206   :  { %v209_v51 = vpop.f32.mrf.mxu0 }
 0x207   :  { %216 = vst [vmem:[#allocation3] sm:$0xff] %v209_v51 }
 0x208   :  { %v281_v52 = vpop.f32.mrf.mxu0 }
 0x20a   :  { %v212_v53 = vpop.f32.mrf.mxu0 }
 0x20b   :  { %217 = vst [vmem:[#allocation3 + $0x8] sm:$0xff] %v212_v53 }
 0x20c   :  { %v282_v54 = vpop.f32.mrf.mxu0 }
 0x20d   :  { %312 = shalt.err (!%p309_p4)
}
 0x20e   :  { %s326_s10 = smov 128   ;;  %s327_s11 = smov 8  }
 0x20f   :  { %229 = dma.vmem_to_hbm [thread:$0]  %s224_s9, 256, %s406_s4, [#allocation4], %s326_s10, %s326_s10, %s327_s11  }
 0x210   :  { %321 = dma.done.wait [#allocation4], 256  }
 0x211   :  { %322 = vsyncadd [#allocation4], 4294967040 }
 0x212   :  { %233 = vsyncpa [#allocation4], 1 }

</bundles_post_ra>
